<compile_context>
chip_gen: v6e
topology: v6e:2x2x1
jax: 0.10.0
libtpu: 0.0.40
codegen_flags: <defaults>
</compile_context>

<pallas_src>
import functools

import jax
import jax.numpy as jnp
from jax import lax
from jax.experimental import pallas as pl
from jax.experimental.pallas import tpu as pltpu

HIDDEN = 64
NUM_GCN_LAYERS = 10  # first: in_channels->64, then 9x 64->64


# ---------------------------------------------------------------------------
# small helpers
# ---------------------------------------------------------------------------
def _mean_pool_matrix(batch, n, num_graphs):
    onehot = (batch[None, :] == jnp.arange(num_graphs)[:, None]).astype(jnp.float32)
    counts = jnp.maximum(jnp.sum(onehot, axis=1, keepdims=True), 1.0)
    return onehot / counts  # (G, N)


def _vmem_capacity_bytes():
    try:
        cap = getattr(pltpu.get_tpu_info(), "vmem_capacity_bytes", None)
        if cap:
            return int(cap)
    except Exception:
        pass
    return 64 * 2**20  # conservative default = v7x per-TensorCore VMEM


def _round_up(v, m):
    return -(-v // m) * m


def _choose_tiling(n, cin, g, out_ch, block_override):
    """Pad the node axis; pick the A^T column-block width from the VMEM budget."""
    cap = _vmem_capacity_bytes()
    budget = int(0.6 * cap)

    def footprint(npad, bn):
        fp = 2 * HIDDEN * npad * 4                       # h ping/pong scratch (f32)
        fp += 2 * cin * npad * 4                         # x^T (double-buffered)
        fp += 2 * npad * bn * 2                          # (A+I)^T block (bf16, 2 buffers)
        fp += npad * bn * 4                              # f32 A_norm block temporary
        fp += 2 * (npad + bn + 8) * 4                    # D^-1/2 column + row block
        fp += 2 * bn * g * 4                             # pool^T block
        fp += 2 * 4 * ((NUM_GCN_LAYERS - 1) * HIDDEN * HIDDEN + HIDDEN * cin
                       + NUM_GCN_LAYERS * HIDDEN + out_ch * (HIDDEN + 1))
        fp += 3 * HIDDEN * bn * 4                        # m / z temporaries
        fp += (HIDDEN + out_ch) * g * 4                  # pooled accumulator + out
        return fp

    if block_override is not None:
        assert block_override % 128 == 0, "block_override must be a multiple of 128"
        npad = _round_up(n, block_override)
        return npad, block_override, footprint(npad, block_override), cap

    npad = _round_up(n, 128)
    if footprint(npad, npad) <= budget:                  # A^T fully VMEM-resident
        return npad, npad, footprint(npad, npad), cap
    for bn in (2048, 1024, 512, 256, 128):               # largest streaming block that fits
        npad = _round_up(n, bn)
        if footprint(npad, bn) <= budget:
            return npad, bn, footprint(npad, bn), cap
    npad = _round_up(n, 128)
    return npad, 128, footprint(npad, 128), cap


# ---------------------------------------------------------------------------
# the single multi-layer kernel
# ---------------------------------------------------------------------------
def _mg_kernel(xt_ref, at_ref, dcol_ref, drow_ref, w0t_ref, b0_ref,
               wst_ref, bst_ref, poolt_ref, wlt_ref, bl_ref,
               out_ref, h_ref, acc_ref):
    l = pl.program_id(0)            # layer index 0 .. NUM_GCN_LAYERS-1
    j = pl.program_id(1)            # column block of A_hat^T / output columns
    nblk = pl.num_programs(1)
    bn = at_ref.shape[1]
    col0 = pl.multiple_of(j * bn, 128)

    # Exact f32 A_norm^T column block rebuilt from the binary bf16 (A+I)^T
    # block and the two D^-1/2 factors (cheap VPU work vs the MXU matmul).
    a_blk = (at_ref[...].astype(jnp.float32) * dcol_ref[...]) * drow_ref[...]

    def gcn_block(src, wt, b):
        # aggregate first (nodes on lanes), then transform -- same product as
        # A_norm @ (x @ W), associated cheaply for the (C, N) layout.
        m = jnp.dot(src, a_blk, preferred_element_type=jnp.float32)      # (C, bn)
        z = jnp.dot(wt, m, preferred_element_type=jnp.float32) + b       # (64, bn)
        return jnp.maximum(z, 0.0)                                       # ReLU (+ eval dropout)

    @pl.when(l == 0)
    def _():                                                # in_channels -> 64
        h_ref[0, :, pl.ds(col0, bn)] = gcn_block(
            xt_ref[...], w0t_ref[...], b0_ref[...])

    def _hidden(src_buf, dst_buf):                          # 64 -> 64, layers 1..9
        wt = wst_ref[l - 1]
        b = bst_ref[l - 1]
        h_ref[dst_buf, :, pl.ds(col0, bn)] = gcn_block(h_ref[src_buf], wt, b)

    @pl.when(jnp.logical_and(l > 0, lax.rem(l, 2) == 1))
    def _():
        _hidden(0, 1)

    @pl.when(jnp.logical_and(l > 0, lax.rem(l, 2) == 0))
    def _():
        _hidden(1, 0)

    # fused global_mean_pool + Linear head on the last layer's output blocks
    @pl.when(l == NUM_GCN_LAYERS - 1)
    def _():
        @pl.when(j == 0)
        def _():
            acc_ref[...] = jnp.zeros_like(acc_ref)

        last_buf = (NUM_GCN_LAYERS - 1) % 2                 # static
        h_blk = h_ref[last_buf, :, pl.ds(col0, bn)]         # (64, bn)
        acc_ref[...] += jnp.dot(h_blk, poolt_ref[...],
                                preferred_element_type=jnp.float32)   # (64, G)

        @pl.when(j == nblk - 1)
        def _():
            out_ref[...] = (jnp.dot(wlt_ref[...], acc_ref[...],
                                    preferred_element_type=jnp.float32)
                            + bl_ref[...])


# ---------------------------------------------------------------------------
# top-level forward
# ---------------------------------------------------------------------------
@functools.partial(jax.jit, static_argnames=("num_graphs", "block_override"))
def motion_generator_forward(x, edge_index, batch, params, num_graphs,
                             block_override=None):
    n, cin = x.shape
    w0, b0, ws, bs, wl, bl = params
    out_ch = wl.shape[1]

    npad, bn, fp, cap = _choose_tiling(n, cin, num_graphs, out_ch, block_override)
    nblk = npad // bn
    pad = npad - n

    # binary (A + I)^T built directly transposed; duplicate edges sum like PyG
    src, dst = edge_index[0], edge_index[1]
    a_t = (jnp.zeros((n, n), jnp.float32).at[src, dst].add(1.0)
           + jnp.eye(n, dtype=jnp.float32))
    deg = jnp.sum(a_t, axis=0)                         # deg_i = sum_j A_hat[i, j]
    dinv = jnp.where(deg > 0, lax.rsqrt(deg), 0.0)

    at_p = jnp.pad(a_t, ((0, pad), (0, pad))).astype(jnp.bfloat16)  # streamed dtype
    dinv_p = jnp.pad(dinv, (0, pad))
    dcol = dinv_p[:, None]                                          # (Npad, 1) f32
    drow = dinv_p[None, :]                                          # (1, Npad) f32
    xt = jnp.pad(x.T, ((0, 0), (0, pad)))                           # (Cin, Npad) f32
    poolt = jnp.pad(_mean_pool_matrix(batch, n, num_graphs).T,
                    ((0, pad), (0, 0)))                             # (Npad, G) f32

    w0t = w0.T                                  # (64, Cin)
    wst = jnp.transpose(ws, (0, 2, 1))          # (9, 64, 64)
    wlt = wl.T                                  # (out, 64)
    b0c = b0.T                                  # (64, 1)
    bstc = jnp.transpose(bs, (0, 2, 1))         # (9, 64, 1)
    blc = bl.T                                  # (out, 1)

    vmem_limit = int(min(0.9 * cap, max(32 * 2**20, 1.4 * fp)))

    out_t = pl.pallas_call(
        _mg_kernel,
        out_shape=jax.ShapeDtypeStruct((out_ch, num_graphs), jnp.float32),
        grid=(NUM_GCN_LAYERS, nblk),
        in_specs=[
            pl.BlockSpec((cin, npad), lambda l, j: (0, 0)),            # x^T (resident)
            pl.BlockSpec((npad, bn), lambda l, j: (0, j)),             # (A+I)^T column block
            pl.BlockSpec((npad, 1), lambda l, j: (0, 0)),              # D^-1/2 (source side)
            pl.BlockSpec((1, bn), lambda l, j: (0, j)),                # D^-1/2 (dest block)
            pl.BlockSpec((HIDDEN, cin), lambda l, j: (0, 0)),          # W0^T
            pl.BlockSpec((HIDDEN, 1), lambda l, j: (0, 0)),            # b0
            pl.BlockSpec((NUM_GCN_LAYERS - 1, HIDDEN, HIDDEN),
                         lambda l, j: (0, 0, 0)),                      # W1..9^T (resident)
            pl.BlockSpec((NUM_GCN_LAYERS - 1, HIDDEN, 1),
                         lambda l, j: (0, 0, 0)),                      # b1..9
            pl.BlockSpec((bn, num_graphs), lambda l, j: (j, 0)),       # pool^T block
            pl.BlockSpec((out_ch, HIDDEN), lambda l, j: (0, 0)),       # W_lin^T
            pl.BlockSpec((out_ch, 1), lambda l, j: (0, 0)),            # b_lin
        ],
        out_specs=pl.BlockSpec((out_ch, num_graphs), lambda l, j: (0, 0)),
        scratch_shapes=[
            pltpu.VMEM((2, HIDDEN, npad), jnp.float32),      # activation ping/pong
            pltpu.VMEM((HIDDEN, num_graphs), jnp.float32),   # pooled accumulator
        ],
        compiler_params=pltpu.CompilerParams(
            # Both grid axes are sequential: layer l+1 consumes every column
            # block of layer l through the resident VMEM scratch.
            dimension_semantics=("arbitrary", "arbitrary"),
            vmem_limit_bytes=vmem_limit,
        ),
    )(xt, at_p, dcol, drow, w0t, b0c, wst, bstc, poolt, wlt, blc)
    return out_t.T


# ---------------------------------------------------------------------------
# params + pure-f32 JAX reference (true model semantics, eval-mode dropout)
# ---------------------------------------------------------------------------
def init_params(key, in_channels, out_channels):
    k = jax.random.split(key, 6)
    scale = 0.1
    w0 = scale * jax.random.normal(k[0], (in_channels, HIDDEN), jnp.float32)
    b0 = scale * jax.random.normal(k[1], (1, HIDDEN), jnp.float32)
    ws = scale * jax.random.normal(k[2], (NUM_GCN_LAYERS - 1, HIDDEN, HIDDEN), jnp.float32)
    bs = scale * jax.random.normal(k[3], (NUM_GCN_LAYERS - 1, 1, HIDDEN), jnp.float32)
    wl = scale * jax.random.normal(k[4], (HIDDEN, out_channels), jnp.float32)
    bl = scale * jax.random.normal(k[5], (1, out_channels), jnp.float32)
    return (w0, b0, ws, bs, wl, bl)


def reference_forward(x, edge_index, batch, params, num_graphs):
    n = x.shape[0]
    src, dst = edge_index[0], edge_index[1]
    a = (jnp.zeros((n, n), jnp.float32).at[dst, src].add(1.0)
         + jnp.eye(n, dtype=jnp.float32))
    deg = jnp.sum(a, axis=1)
    dinv = jnp.where(deg > 0, lax.rsqrt(deg), 0.0)
    a_norm = a * dinv[:, None] * dinv[None, :]
    pool = _mean_pool_matrix(batch, n, num_graphs)
    w0, b0, ws, bs, wl, bl = params
    h = jnp.maximum(a_norm @ (x @ w0) + b0, 0.0)
    for i in range(NUM_GCN_LAYERS - 1):
        h = jnp.maximum(a_norm @ (h @ ws[i]) + bs[i], 0.0)
    return pool @ h @ wl + bl


def _ring_graph(num_graphs, nodes_per_graph):
    srcs, dsts = [], []
    for g in range(num_graphs):
        base = g * nodes_per_graph
        for i in range(nodes_per_graph):
            j = (i + 1) % nodes_per_graph
            srcs += [base + i, base + j]
            dsts += [base + j, base + i]
    edge_index = jnp.array([srcs, dsts], dtype=jnp.int32)
    batch = jnp.repeat(jnp.arange(num_graphs, dtype=jnp.int32), nodes_per_graph)
    return edge_index, batch


if __name__ == "__main__":
    key = jax.random.PRNGKey(0)
    in_channels, out_channels, num_graphs = 4, 8, 2
    kx1, kx2, kp = jax.random.split(key, 3)
    params = init_params(kp, in_channels, out_channels)

    # case 1: tiny ragged graphs (N = 16) -> padded to 128, single resident A block
    npg1 = 8
    x1 = jax.random.normal(kx1, (num_graphs * npg1, in_channels), jnp.float32)
    ei1, b1 = _ring_graph(num_graphs, npg1)
    out1 = jax.block_until_ready(
        motion_generator_forward(x1, ei1, b1, params, num_graphs))
    ref1 = reference_forward(x1, ei1, b1, params, num_graphs)
    assert out1.shape == (num_graphs, out_channels)
    assert jnp.allclose(out1, ref1, atol=1e-3, rtol=1e-3), "resident path mismatch"

    # case 2: N = 256, auto tiling (A^T resident on any real TPU generation)
    npg2 = 128
    x2 = jax.random.normal(kx2, (num_graphs * npg2, in_channels), jnp.float32)
    ei2, b2 = _ring_graph(num_graphs, npg2)
    out2 = jax.block_until_ready(
        motion_generator_forward(x2, ei2, b2, params, num_graphs))
    ref2 = reference_forward(x2, ei2, b2, params, num_graphs)
    assert out2.shape == (num_graphs, out_channels)
    assert jnp.allclose(out2, ref2, atol=1e-3, rtol=1e-3), "auto path mismatch"

    # case 3: same graph, forced 128-wide column blocks -> exercises the
    # multi-block A^T streaming + pooled accumulation used for large N
    out3 = jax.block_until_ready(
        motion_generator_forward(x2, ei2, b2, params, num_graphs,
                                 block_override=128))
    assert jnp.allclose(out3, ref2, atol=1e-3, rtol=1e-3), "tiled path mismatch"

    print("KERNEL_OK")
</pallas_src>

<mosaic_0001>
module attributes {stable_mosaic.version = 11 : i64} {
  func.func private @main(%arg0: i32) attributes {dimension_semantics = [#tpu.dimension_semantics<core_parallel>], iteration_bounds = array<i64: 2>, tpu.core_type = #tpu.core_type<sc_scalar_subcore>, window_params = []} {
    return
  }
}

module attributes {stable_mosaic.version = 11 : i64} {
  func.func private @main(%arg0: i32) attributes {dimension_semantics = [#tpu.dimension_semantics<core_parallel>], iteration_bounds = array<i64: 2>, tpu.core_type = #tpu.core_type<sc_scalar_subcore>, window_params = []} {
    return
  }
}

module attributes {stable_mosaic.version = 11 : i64} {
  func.func @_mg_kernel(%arg0: i32, %arg1: i32, %arg2: memref<4x128xf32, #tpu.memory_space<vmem>>, %arg3: memref<128x128xbf16, #tpu.memory_space<vmem>>, %arg4: memref<128x1xf32, #tpu.memory_space<vmem>>, %arg5: memref<1x128xf32, #tpu.memory_space<vmem>>, %arg6: memref<64x4xf32, #tpu.memory_space<vmem>>, %arg7: memref<64x1xf32, #tpu.memory_space<vmem>>, %arg8: memref<9x64x64xf32, #tpu.memory_space<vmem>>, %arg9: memref<9x64x1xf32, #tpu.memory_space<vmem>>, %arg10: memref<128x2xf32, #tpu.memory_space<vmem>>, %arg11: memref<8x64xf32, #tpu.memory_space<vmem>>, %arg12: memref<8x1xf32, #tpu.memory_space<vmem>>, %arg13: memref<8x2xf32, #tpu.memory_space<vmem>>, %arg14: memref<2x64x128xf32, #tpu.memory_space<vmem>>, %arg15: memref<64x2xf32, #tpu.memory_space<vmem>>) attributes {dimension_semantics = [#tpu.dimension_semantics<arbitrary>, #tpu.dimension_semantics<arbitrary>], iteration_bounds = array<i64: 10, 1>, scalar_prefetch = 0 : i64, scratch_operands = 2 : i64, tpu.core_type = #tpu.core_type<tc>, window_params = [{pipeline_mode = #tpu.pipeline_mode<synchronous>, transform_indices = @transform_0, window_bounds = array<i64: 4, 128>}, {transform_indices = @transform_1, window_bounds = array<i64: 128, 128>}, {pipeline_mode = #tpu.pipeline_mode<synchronous>, transform_indices = @transform_2, window_bounds = array<i64: 128, 1>}, {transform_indices = @transform_3, window_bounds = array<i64: 1, 128>}, {pipeline_mode = #tpu.pipeline_mode<synchronous>, transform_indices = @transform_4, window_bounds = array<i64: 64, 4>}, {pipeline_mode = #tpu.pipeline_mode<synchronous>, transform_indices = @transform_5, window_bounds = array<i64: 64, 1>}, {pipeline_mode = #tpu.pipeline_mode<synchronous>, transform_indices = @transform_6, window_bounds = array<i64: 9, 64, 64>}, {pipeline_mode = #tpu.pipeline_mode<synchronous>, transform_indices = @transform_7, window_bounds = array<i64: 9, 64, 1>}, {transform_indices = @transform_8, window_bounds = array<i64: 128, 2>}, {pipeline_mode = #tpu.pipeline_mode<synchronous>, transform_indices = @transform_9, window_bounds = array<i64: 8, 64>}, {pipeline_mode = #tpu.pipeline_mode<synchronous>, transform_indices = @transform_10, window_bounds = array<i64: 8, 1>}, {pipeline_mode = #tpu.pipeline_mode<synchronous>, transform_indices = @transform_11, window_bounds = array<i64: 8, 2>}]} {
    %c128_i32 = arith.constant 128 : i32
    %0 = arith.muli %arg1, %c128_i32 : i32
    %1 = tpu.assume_multiple %0, 128 : i32
    %c0 = arith.constant 0 : index
    %c0_0 = arith.constant 0 : index
    %2 = vector.load %arg3[%c0, %c0_0] : memref<128x128xbf16, #tpu.memory_space<vmem>>, vector<128x128xbf16>
    %3 = arith.extf %2 : vector<128x128xbf16> to vector<128x128xf32>
    %c0_1 = arith.constant 0 : index
    %c0_2 = arith.constant 0 : index
    %4 = vector.load %arg4[%c0_1, %c0_2] : memref<128x1xf32, #tpu.memory_space<vmem>>, vector<128x1xf32>
    %5 = vector.broadcast %4 : vector<128x1xf32> to vector<128x128xf32>
    %6 = arith.mulf %3, %5 : vector<128x128xf32>
    %c0_3 = arith.constant 0 : index
    %c0_4 = arith.constant 0 : index
    %7 = vector.load %arg5[%c0_3, %c0_4] : memref<1x128xf32, #tpu.memory_space<vmem>>, vector<1x128xf32>
    %8 = vector.broadcast %7 : vector<1x128xf32> to vector<128x128xf32>
    %9 = arith.mulf %6, %8 : vector<128x128xf32>
    %c0_i32 = arith.constant 0 : i32
    %10 = arith.cmpi eq, %arg0, %c0_i32 : i32
    %11 = arith.extui %10 : i1 to i32
    %c0_i32_5 = arith.constant 0 : i32
    %12 = arith.cmpi ne, %11, %c0_i32_5 : i32
    scf.if %12 {
      %c0_13 = arith.constant 0 : index
      %c0_14 = arith.constant 0 : index
      %28 = vector.load %arg2[%c0_13, %c0_14] : memref<4x128xf32, #tpu.memory_space<vmem>>, vector<4x128xf32>
      %c0_15 = arith.constant 0 : index
      %c0_16 = arith.constant 0 : index
      %29 = vector.load %arg6[%c0_15, %c0_16] : memref<64x4xf32, #tpu.memory_space<vmem>>, vector<64x4xf32>
      %c0_17 = arith.constant 0 : index
      %c0_18 = arith.constant 0 : index
      %30 = vector.load %arg7[%c0_17, %c0_18] : memref<64x1xf32, #tpu.memory_space<vmem>>, vector<64x1xf32>
      %cst = arith.constant dense<0.000000e+00> : vector<4x128xf32>
      %31 = tpu.matmul %28, %9, %cst {dimension_numbers = #tpu.dot_dimension_numbers<[1], [0], [0], [1], [0, 0, 1, 1], [], []>} : vector<4x128xf32>, vector<128x128xf32>, vector<4x128xf32> -> vector<4x128xf32>
      %cst_19 = arith.constant dense<0.000000e+00> : vector<64x128xf32>
      %32 = tpu.matmul %29, %31, %cst_19 {dimension_numbers = #tpu.dot_dimension_numbers<[1], [0], [0], [1], [0, 0, 1, 1], [], []>} : vector<64x4xf32>, vector<4x128xf32>, vector<64x128xf32> -> vector<64x128xf32>
      %33 = vector.broadcast %30 : vector<64x1xf32> to vector<64x128xf32>
      %34 = arith.addf %32, %33 : vector<64x128xf32>
      %cst_20 = arith.constant 0.000000e+00 : f32
      %35 = vector.broadcast %cst_20 : f32 to vector<64x128xf32>
      %36 = arith.maximumf %34, %35 : vector<64x128xf32>
      %c0_21 = arith.constant 0 : index
      %c0_22 = arith.constant 0 : index
      %37 = arith.index_cast %1 : i32 to index
      %38 = vector.load %arg14[%c0_21, %c0_22, %37] : memref<2x64x128xf32, #tpu.memory_space<vmem>>, vector<1x64x128xf32>
      %39 = vector.shape_cast %38 : vector<1x64x128xf32> to vector<64x128xf32>
      %40 = vector.shape_cast %36 : vector<64x128xf32> to vector<1x64x128xf32>
      tpu.vector_store %arg14[%c0_21, %c0_22, %37], %40 {strides = array<i32>} : memref<2x64x128xf32, #tpu.memory_space<vmem>>, vector<1x64x128xf32>,
    } else {
    }
    %c0_i32_6 = arith.constant 0 : i32
    %13 = arith.cmpi sgt, %arg0, %c0_i32_6 : i32
    %c2_i32 = arith.constant 2 : i32
    %14 = arith.remsi %arg0, %c2_i32 : i32
    %c1_i32 = arith.constant 1 : i32
    %15 = arith.cmpi eq, %14, %c1_i32 : i32
    %16 = arith.andi %13, %15 : i1
    %17 = arith.extui %16 : i1 to i32
    %c0_i32_7 = arith.constant 0 : i32
    %18 = arith.cmpi ne, %17, %c0_i32_7 : i32
    scf.if %18 {
      %c1_i32_13 = arith.constant 1 : i32
      %28 = arith.subi %arg0, %c1_i32_13 : i32
      %29 = arith.index_cast %28 : i32 to index
      %c0_14 = arith.constant 0 : index
      %c0_15 = arith.constant 0 : index
      %30 = vector.load %arg8[%29, %c0_14, %c0_15] : memref<9x64x64xf32, #tpu.memory_space<vmem>>, vector<1x64x64xf32>
      %31 = vector.shape_cast %30 : vector<1x64x64xf32> to vector<64x64xf32>
      %c1_i32_16 = arith.constant 1 : i32
      %32 = arith.subi %arg0, %c1_i32_16 : i32
      %33 = arith.index_cast %32 : i32 to index
      %c0_17 = arith.constant 0 : index
      %c0_18 = arith.constant 0 : index
      %34 = vector.load %arg9[%33, %c0_17, %c0_18] : memref<9x64x1xf32, #tpu.memory_space<vmem>>, vector<1x64x1xf32>
      %35 = vector.shape_cast %34 : vector<1x64x1xf32> to vector<64x1xf32>
      %c0_19 = arith.constant 0 : index
      %c0_20 = arith.constant 0 : index
      %c0_21 = arith.constant 0 : index
      %36 = vector.load %arg14[%c0_19, %c0_20, %c0_21] : memref<2x64x128xf32, #tpu.memory_space<vmem>>, vector<1x64x128xf32>
      %37 = vector.shape_cast %36 : vector<1x64x128xf32> to vector<64x128xf32>
      %cst = arith.constant dense<0.000000e+00> : vector<64x128xf32>
      %38 = tpu.matmul %37, %9, %cst {dimension_numbers = #tpu.dot_dimension_numbers<[1], [0], [0], [1], [0, 0, 1, 1], [], []>} : vector<64x128xf32>, vector<128x128xf32>, vector<64x128xf32> -> vector<64x128xf32>
      %cst_22 = arith.constant dense<0.000000e+00> : vector<64x128xf32>
      %39 = tpu.matmul %31, %38, %cst_22 {dimension_numbers = #tpu.dot_dimension_numbers<[1], [0], [0], [1], [0, 0, 1, 1], [], []>} : vector<64x64xf32>, vector<64x128xf32>, vector<64x128xf32> -> vector<64x128xf32>
      %40 = vector.broadcast %35 : vector<64x1xf32> to vector<64x128xf32>
      %41 = arith.addf %39, %40 : vector<64x128xf32>
      %cst_23 = arith.constant 0.000000e+00 : f32
      %42 = vector.broadcast %cst_23 : f32 to vector<64x128xf32>
      %43 = arith.maximumf %41, %42 : vector<64x128xf32>
      %c1 = arith.constant 1 : index
      %c0_24 = arith.constant 0 : index
      %44 = arith.index_cast %1 : i32 to index
      %45 = vector.load %arg14[%c1, %c0_24, %44] : memref<2x64x128xf32, #tpu.memory_space<vmem>>, vector<1x64x128xf32>
      %46 = vector.shape_cast %45 : vector<1x64x128xf32> to vector<64x128xf32>
      %47 = vector.shape_cast %43 : vector<64x128xf32> to vector<1x64x128xf32>
      tpu.vector_store %arg14[%c1, %c0_24, %44], %47 {strides = array<i32>} : memref<2x64x128xf32, #tpu.memory_space<vmem>>, vector<1x64x128xf32>,
    } else {
    }
    %c0_i32_8 = arith.constant 0 : i32
    %19 = arith.cmpi sgt, %arg0, %c0_i32_8 : i32
    %c2_i32_9 = arith.constant 2 : i32
    %20 = arith.remsi %arg0, %c2_i32_9 : i32
    %c0_i32_10 = arith.constant 0 : i32
    %21 = arith.cmpi eq, %20, %c0_i32_10 : i32
    %22 = arith.andi %19, %21 : i1
    %23 = arith.extui %22 : i1 to i32
    %c0_i32_11 = arith.constant 0 : i32
    %24 = arith.cmpi ne, %23, %c0_i32_11 : i32
    scf.if %24 {
      %c1_i32_13 = arith.constant 1 : i32
      %28 = arith.subi %arg0, %c1_i32_13 : i32
      %29 = arith.index_cast %28 : i32 to index
      %c0_14 = arith.constant 0 : index
      %c0_15 = arith.constant 0 : index
      %30 = vector.load %arg8[%29, %c0_14, %c0_15] : memref<9x64x64xf32, #tpu.memory_space<vmem>>, vector<1x64x64xf32>
      %31 = vector.shape_cast %30 : vector<1x64x64xf32> to vector<64x64xf32>
      %c1_i32_16 = arith.constant 1 : i32
      %32 = arith.subi %arg0, %c1_i32_16 : i32
      %33 = arith.index_cast %32 : i32 to index
      %c0_17 = arith.constant 0 : index
      %c0_18 = arith.constant 0 : index
      %34 = vector.load %arg9[%33, %c0_17, %c0_18] : memref<9x64x1xf32, #tpu.memory_space<vmem>>, vector<1x64x1xf32>
      %35 = vector.shape_cast %34 : vector<1x64x1xf32> to vector<64x1xf32>
      %c1 = arith.constant 1 : index
      %c0_19 = arith.constant 0 : index
      %c0_20 = arith.constant 0 : index
      %36 = vector.load %arg14[%c1, %c0_19, %c0_20] : memref<2x64x128xf32, #tpu.memory_space<vmem>>, vector<1x64x128xf32>
      %37 = vector.shape_cast %36 : vector<1x64x128xf32> to vector<64x128xf32>
      %cst = arith.constant dense<0.000000e+00> : vector<64x128xf32>
      %38 = tpu.matmul %37, %9, %cst {dimension_numbers = #tpu.dot_dimension_numbers<[1], [0], [0], [1], [0, 0, 1, 1], [], []>} : vector<64x128xf32>, vector<128x128xf32>, vector<64x128xf32> -> vector<64x128xf32>
      %cst_21 = arith.constant dense<0.000000e+00> : vector<64x128xf32>
      %39 = tpu.matmul %31, %38, %cst_21 {dimension_numbers = #tpu.dot_dimension_numbers<[1], [0], [0], [1], [0, 0, 1, 1], [], []>} : vector<64x64xf32>, vector<64x128xf32>, vector<64x128xf32> -> vector<64x128xf32>
      %40 = vector.broadcast %35 : vector<64x1xf32> to vector<64x128xf32>
      %41 = arith.addf %39, %40 : vector<64x128xf32>
      %cst_22 = arith.constant 0.000000e+00 : f32
      %42 = vector.broadcast %cst_22 : f32 to vector<64x128xf32>
      %43 = arith.maximumf %41, %42 : vector<64x128xf32>
      %c0_23 = arith.constant 0 : index
      %c0_24 = arith.constant 0 : index
      %44 = arith.index_cast %1 : i32 to index
      %45 = vector.load %arg14[%c0_23, %c0_24, %44] : memref<2x64x128xf32, #tpu.memory_space<vmem>>, vector<1x64x128xf32>
      %46 = vector.shape_cast %45 : vector<1x64x128xf32> to vector<64x128xf32>
      %47 = vector.shape_cast %43 : vector<64x128xf32> to vector<1x64x128xf32>
      tpu.vector_store %arg14[%c0_23, %c0_24, %44], %47 {strides = array<i32>} : memref<2x64x128xf32, #tpu.memory_space<vmem>>, vector<1x64x128xf32>,
    } else {
    }
    %c9_i32 = arith.constant 9 : i32
    %25 = arith.cmpi eq, %arg0, %c9_i32 : i32
    %26 = arith.extui %25 : i1 to i32
    %c0_i32_12 = arith.constant 0 : i32
    %27 = arith.cmpi ne, %26, %c0_i32_12 : i32
    scf.if %27 {
      %c0_i32_13 = arith.constant 0 : i32
      %28 = arith.cmpi eq, %arg1, %c0_i32_13 : i32
      %29 = arith.extui %28 : i1 to i32
      %c0_i32_14 = arith.constant 0 : i32
      %30 = arith.cmpi ne, %29, %c0_i32_14 : i32
      scf.if %30 {
        %cst_24 = arith.constant 0.000000e+00 : f32
        %42 = vector.broadcast %cst_24 : f32 to vector<64x2xf32>
        %c0_25 = arith.constant 0 : index
        %c0_26 = arith.constant 0 : index
        %43 = vector.load %arg15[%c0_25, %c0_26] : memref<64x2xf32, #tpu.memory_space<vmem>>, vector<64x2xf32>
        tpu.vector_store %arg15[%c0_25, %c0_26], %42 {strides = array<i32>} : memref<64x2xf32, #tpu.memory_space<vmem>>, vector<64x2xf32>,
      } else {
      }
      %c1 = arith.constant 1 : index
      %c0_15 = arith.constant 0 : index
      %31 = arith.index_cast %1 : i32 to index
      %32 = vector.load %arg14[%c1, %c0_15, %31] : memref<2x64x128xf32, #tpu.memory_space<vmem>>, vector<1x64x128xf32>
      %33 = vector.shape_cast %32 : vector<1x64x128xf32> to vector<64x128xf32>
      %c0_16 = arith.constant 0 : index
      %c0_17 = arith.constant 0 : index
      %34 = vector.load %arg15[%c0_16, %c0_17] : memref<64x2xf32, #tpu.memory_space<vmem>>, vector<64x2xf32>
      %c0_18 = arith.constant 0 : index
      %c0_19 = arith.constant 0 : index
      %35 = vector.load %arg10[%c0_18, %c0_19] : memref<128x2xf32, #tpu.memory_space<vmem>>, vector<128x2xf32>
      %cst = arith.constant dense<0.000000e+00> : vector<64x2xf32>
      %36 = tpu.matmul %33, %35, %cst {dimension_numbers = #tpu.dot_dimension_numbers<[1], [0], [0], [1], [0, 0, 1, 1], [], []>} : vector<64x128xf32>, vector<128x2xf32>, vector<64x2xf32> -> vector<64x2xf32>
      %37 = arith.addf %34, %36 : vector<64x2xf32>
      %c0_20 = arith.constant 0 : index
      %c0_21 = arith.constant 0 : index
      %38 = vector.load %arg15[%c0_20, %c0_21] : memref<64x2xf32, #tpu.memory_space<vmem>>, vector<64x2xf32>
      tpu.vector_store %arg15[%c0_20, %c0_21], %37 {strides = array<i32>} : memref<64x2xf32, #tpu.memory_space<vmem>>, vector<64x2xf32>,
      %c0_i32_22 = arith.constant 0 : i32
      %39 = arith.cmpi eq, %arg1, %c0_i32_22 : i32
      %40 = arith.extui %39 : i1 to i32
      %c0_i32_23 = arith.constant 0 : i32
      %41 = arith.cmpi ne, %40, %c0_i32_23 : i32
      scf.if %41 {
        %c0_24 = arith.constant 0 : index
        %c0_25 = arith.constant 0 : index
        %42 = vector.load %arg11[%c0_24, %c0_25] : memref<8x64xf32, #tpu.memory_space<vmem>>, vector<8x64xf32>
        %c0_26 = arith.constant 0 : index
        %c0_27 = arith.constant 0 : index
        %43 = vector.load %arg15[%c0_26, %c0_27] : memref<64x2xf32, #tpu.memory_space<vmem>>, vector<64x2xf32>
        %cst_28 = arith.constant dense<0.000000e+00> : vector<8x2xf32>
        %44 = tpu.matmul %42, %43, %cst_28 {dimension_numbers = #tpu.dot_dimension_numbers<[1], [0], [0], [1], [0, 0, 1, 1], [], []>} : vector<8x64xf32>, vector<64x2xf32>, vector<8x2xf32> -> vector<8x2xf32>
        %c0_29 = arith.constant 0 : index
        %c0_30 = arith.constant 0 : index
        %45 = vector.load %arg12[%c0_29, %c0_30] : memref<8x1xf32, #tpu.memory_space<vmem>>, vector<8x1xf32>
        %46 = vector.broadcast %45 : vector<8x1xf32> to vector<8x2xf32>
        %47 = arith.addf %44, %46 : vector<8x2xf32>
        %c0_31 = arith.constant 0 : index
        %c0_32 = arith.constant 0 : index
        %48 = vector.load %arg13[%c0_31, %c0_32] : memref<8x2xf32, #tpu.memory_space<vmem>>, vector<8x2xf32>
        tpu.vector_store %arg13[%c0_31, %c0_32], %47 {strides = array<i32>} : memref<8x2xf32, #tpu.memory_space<vmem>>, vector<8x2xf32>,
      } else {
      }
    } else {
    }
    return
  }
  func.func @transform_0(%arg0: i32, %arg1: i32) -> (i32, i32) {
    %c0_i32 = arith.constant 0 : i32
    %c0_i32_0 = arith.constant 0 : i32
    %c0_i32_1 = arith.constant 0 : i32
    return %c0_i32, %c0_i32_0 : i32, i32
  }
  func.func @transform_1(%arg0: i32, %arg1: i32) -> (i32, i32) {
    %c0_i32 = arith.constant 0 : i32
    %c0_i32_0 = arith.constant 0 : i32
    return %c0_i32, %arg1 : i32, i32
  }
  func.func @transform_2(%arg0: i32, %arg1: i32) -> (i32, i32) {
    %c0_i32 = arith.constant 0 : i32
    %c0_i32_0 = arith.constant 0 : i32
    %c0_i32_1 = arith.constant 0 : i32
    return %c0_i32, %c0_i32_0 : i32, i32
  }
  func.func @transform_3(%arg0: i32, %arg1: i32) -> (i32, i32) {
    %c0_i32 = arith.constant 0 : i32
    %c0_i32_0 = arith.constant 0 : i32
    return %c0_i32, %arg1 : i32, i32
  }
  func.func @transform_4(%arg0: i32, %arg1: i32) -> (i32, i32) {
    %c0_i32 = arith.constant 0 : i32
    %c0_i32_0 = arith.constant 0 : i32
    %c0_i32_1 = arith.constant 0 : i32
    return %c0_i32, %c0_i32_0 : i32, i32
  }
  func.func @transform_5(%arg0: i32, %arg1: i32) -> (i32, i32) {
    %c0_i32 = arith.constant 0 : i32
    %c0_i32_0 = arith.constant 0 : i32
    %c0_i32_1 = arith.constant 0 : i32
    return %c0_i32, %c0_i32_0 : i32, i32
  }
  func.func @transform_6(%arg0: i32, %arg1: i32) -> (i32, i32, i32) {
    %c0_i32 = arith.constant 0 : i32
    %c0_i32_0 = arith.constant 0 : i32
    %c0_i32_1 = arith.constant 0 : i32
    %c0_i32_2 = arith.constant 0 : i32
    return %c0_i32, %c0_i32_0, %c0_i32_1 : i32, i32, i32
  }
  func.func @transform_7(%arg0: i32, %arg1: i32) -> (i32, i32, i32) {
    %c0_i32 = arith.constant 0 : i32
    %c0_i32_0 = arith.constant 0 : i32
    %c0_i32_1 = arith.constant 0 : i32
    %c0_i32_2 = arith.constant 0 : i32
    return %c0_i32, %c0_i32_0, %c0_i32_1 : i32, i32, i32
  }
  func.func @transform_8(%arg0: i32, %arg1: i32) -> (i32, i32) {
    %c0_i32 = arith.constant 0 : i32
    %c0_i32_0 = arith.constant 0 : i32
    return %arg1, %c0_i32 : i32, i32
  }
  func.func @transform_9(%arg0: i32, %arg1: i32) -> (i32, i32) {
    %c0_i32 = arith.constant 0 : i32
    %c0_i32_0 = arith.constant 0 : i32
    %c0_i32_1 = arith.constant 0 : i32
    return %c0_i32, %c0_i32_0 : i32, i32
  }
  func.func @transform_10(%arg0: i32, %arg1: i32) -> (i32, i32) {
    %c0_i32 = arith.constant 0 : i32
    %c0_i32_0 = arith.constant 0 : i32
    %c0_i32_1 = arith.constant 0 : i32
    return %c0_i32, %c0_i32_0 : i32, i32
  }
  func.func @transform_11(%arg0: i32, %arg1: i32) -> (i32, i32) {
    %c0_i32 = arith.constant 0 : i32
    %c0_i32_0 = arith.constant 0 : i32
    %c0_i32_1 = arith.constant 0 : i32
    return %c0_i32, %c0_i32_0 : i32, i32
  }
}

</mosaic_0001>

<bundles_post_ra>
// kernel: motion_generator_forward.1
= control target key start
LH: loop header
LB: loop body
LE: loop exit
PB: predicated region body
PF: predicated region fallthrough
CT: control target
= control target key end

     0   :  { %s2508_s17 = smov 0   ;;  %s2510_s18 = smov 0   ;;  %s2956_s0 = inlined_call_operand.vmem [shape: f32[4,128], index: 0, kind: input, shape index: {}]   ;;  %s2957_s1 = inlined_call_operand.vmem [shape: bf16[128,128], index: 1, kind: input, shape index: {}]   ;;  %s2958_s2 = inlined_call_operand.vmem [shape: f32[128,1], index: 2, kind: input, shape index: {}]   ;;  %s2959_s3 = inlined_call_operand.vmem [shape: f32[1,128], index: 3, kind: input, shape index: {}]   ;;  %s2960_s4 = inlined_call_operand.vmem [shape: f32[64,4], index: 4, kind: input, shape index: {}]   ;;  %s2961_s5 = inlined_call_operand.vmem [shape: f32[64,1], index: 5, kind: input, shape index: {}]   ;;  %s2962_s6 = inlined_call_operand.vmem [shape: f32[9,64,64], index: 6, kind: input, shape index: {}]   ;;  %s2963_s7 = inlined_call_operand.vmem [shape: f32[9,64,1], index: 7, kind: input, shape index: {}]   ;;  %s2964_s8 = inlined_call_operand.vmem [shape: f32[128,2], index: 8, kind: input, shape index: {}]   ;;  %s2965_s9 = inlined_call_operand.vmem [shape: f32[8,64], index: 9, kind: input, shape index: {}]   ;;  %s2966_s10 = inlined_call_operand.vmem [shape: f32[8,1], index: 10, kind: input, shape index: {}]   ;;  %s2967_s11 = inlined_call_operand.vmem [shape: f32[8,2], index: 11, kind: output, shape index: {}]  }
   0x1   :  { %s2512_s19 = smov 0  }
   0x2 LB: > { %s33_s20 = sadd.s32 1, %s2433_s18  ;;  %p1886_p0 = scmp.ge.s32.totalorder %s2437_s19, 1  ;;  %s2437_s19 = sphi %s2512_s19, %s21_s19   ;;  %s2433_s18 = sphi %s2510_s18, %s2969_s18   ;;  %s2429_s17 = sphi %s2508_s17, %s2968_s17  }
   0x3   : > { %p35_p1 = scmp.ge.s32.totalorder %s33_s20, 10  ;;  %p362_p2 = scmp.lt.s32.totalorder %s2437_s19, 11 }
   0x5   : > { %s2971_s20 = smov (%p35_p1, %s33_s20), 0  ;;  %p363_p3 = pnand %p1886_p0, %p362_p2 }
   0x6   : > { %p1888_p4 = scmp.ne.s32.totalorder (!%p363_p3), %s2429_s17, 0 }
   0x7   : > { %366 = sbr.rel (%p363_p3) target bundleno = 2028 (0x7ec), region = 64 }
   0xc   : > { %v452_v0 = vld [vmem:[%s2958_s2 + $0x10] sm:$0xff]  ;;  %v450_v1 = vld [vmem:[%s2958_s2] sm:$0xff]  ;;  %v2439_v2 = vmov 0   ;;  %v453_v3 = vld [vmem:[%s2958_s2 + $0x18] sm:$0xff] }
   0xd   : > { %2407 = vset.pattern.permute.xlu1 %v2439_v2  ;;  %2406 = vset.pattern.permute.xlu0 %v2439_v2  ;;  %v451_v4 = vld [vmem:[%s2958_s2 + $0x8] sm:$0xff]  ;;  %v454_v6 = vld [vmem:[%s2958_s2 + $0x20] sm:$0xff]  ;;  %v457_v7 = vld [vmem:[%s2958_s2 + $0x38] sm:$0xff] }
   0xe   : > { %478 = vperm.xlu1 %2407, %v452_v0   ;;  %468 = vperm.xlu0 %2406, %v450_v1   ;;  %v455_v5 = vld [vmem:[%s2958_s2 + $0x28] sm:$0xff]  ;;  %v456_v8 = vld [vmem:[%s2958_s2 + $0x30] sm:$0xff]  ;;  %v458_v10 = vld [vmem:[%s2958_s2 + $0x40] sm:$0xff] }
   0xf   : > { %v459_v9 = vld [vmem:[%s2958_s2 + $0x48] sm:$0xff]  ;;  %v461_v11 = vld [vmem:[%s2958_s2 + $0x58] sm:$0xff]  ;;  %v460_v12 = vld [vmem:[%s2958_s2 + $0x50] sm:$0xff] }
  0x10   : > { %v463_v13 = vld [vmem:[%s2958_s2 + $0x68] sm:$0xff]  ;;  %v462_v14 = vld [vmem:[%s2958_s2 + $0x60] sm:$0xff]  ;;  %v465_v15 = vld [vmem:[%s2958_s2 + $0x78] sm:$0xff] }
  0x11   : > { %v464_v16 = vld [vmem:[%s2958_s2 + $0x70] sm:$0xff]  ;;  %v1971_v17 = vld [vmem:[%s2957_s1 + $0x8] sm:$0xff]   ;;  %v1940_v18 = vld [vmem:[%s2957_s1] sm:$0xff]  }
  0x12   : > { %483 = vperm.xlu1 %2407, %v453_v3   ;;  %473 = vperm.xlu0 %2406, %v451_v4   ;;  %v1945_v19 = vunpack.c.l.bf16 %v1971_v17  ;;  %v1941_v20 = vunpack.c.l.bf16 %v1940_v18  ;;  %v2585_v21 = vld [vmem:[%s2959_s3] ss:$0 sm:$0xff]  ;;  %v1946_v26 = vunpack.c.h.bf16 %v1971_v17  ;;  %v1942_v27 = vunpack.c.h.bf16 %v1940_v18  ;;  %v1972_v28 = vld [vmem:[%s2957_s1 + $0x10] sm:$0xff]   ;;  %v1973_v37 = vld [vmem:[%s2957_s1 + $0x18] sm:$0xff]  }
  0x13   : > { %v1950_v35 = vunpack.c.h.bf16 %v1972_v28  ;;  %v1949_v36 = vunpack.c.l.bf16 %v1972_v28  ;;  %v1954_v44 = vunpack.c.h.bf16 %v1973_v37  ;;  %v1953_v45 = vunpack.c.l.bf16 %v1973_v37  ;;  %v1974_v46 = vld [vmem:[%s2957_s1 + $0x20] sm:$0xff]   ;;  %v1975_v55 = vld [vmem:[%s2957_s1 + $0x28] sm:$0xff]   ;;  %v1976_v0 = vld [vmem:[%s2957_s1 + $0x30] sm:$0xff]  }
  0x14   : > { %v1958_v53 = vunpack.c.h.bf16 %v1974_v46  ;;  %v1957_v54 = vunpack.c.l.bf16 %v1974_v46  ;;  %v1962_v62 = vunpack.c.h.bf16 %v1975_v55  ;;  %v1961_v63 = vunpack.c.l.bf16 %v1975_v55 }
  0x16   : > { %493 = vperm.xlu1 %2407, %v455_v5   ;;  %488 = vperm.xlu0 %2406, %v454_v6  }
  0x1a   : > { %503 = vperm.xlu1 %2407, %v457_v7   ;;  %498 = vperm.xlu0 %2406, %v456_v8   ;;  %v1966_v7 = vunpack.c.h.bf16 %v1976_v0  ;;  %v1965_v8 = vunpack.c.l.bf16 %v1976_v0 }
  0x1e   : > { %513 = vperm.xlu1 %2407, %v459_v9   ;;  %508 = vperm.xlu0 %2406, %v458_v10   ;;  %v1977_v9 = vld [vmem:[%s2957_s1 + $0x38] sm:$0xff]  }
  0x1f   : > { %v1969_v17 = vunpack.c.l.bf16 %v1977_v9 }
  0x22   : > { %523 = vperm.xlu1 %2407, %v461_v11   ;;  %518 = vperm.xlu0 %2406, %v460_v12  }
  0x26   : > { %533 = vperm.xlu1 %2407, %v463_v13   ;;  %528 = vperm.xlu0 %2406, %v462_v14  }
  0x2a   : > { %543 = vperm.xlu1 %2407, %v465_v15   ;;  %538 = vperm.xlu0 %2406, %v464_v16   ;;  %v1970_v16 = vunpack.c.h.bf16 %v1977_v9 }
  0x89   : > { %v479_v22 = vpop.permute.xlu1 %478  ;;  %v469_v23 = vpop.permute.xlu0 %468 }
  0x8a   : > { %v548_v24 = vmul.f32 %v1945_v19, %v479_v22  ;;  %v546_v25 = vmul.f32 %v1941_v20, %v469_v23 }
  0x8c   : > { %v2591_v29 = vmul.f32 %v2585_v21, %v548_v24  ;;  %v2594_v30 = vmul.f32 %v2585_v21, %v546_v25 }
  0x8d   : > { %v484_v31 = vpop.permute.xlu1 %483  ;;  %v474_v32 = vpop.permute.xlu0 %473 }
  0x8e   : > { %v549_v33 = vmul.f32 %v1946_v26, %v484_v31  ;;  %v547_v34 = vmul.f32 %v1942_v27, %v474_v32 }
  0x90   : > { %v2600_v38 = vmul.f32 %v2585_v21, %v549_v33  ;;  %v2603_v39 = vmul.f32 %v2585_v21, %v547_v34 }
  0x91   : > { %v494_v40 = vpop.permute.xlu1 %493  ;;  %v489_v41 = vpop.permute.xlu0 %488 }
  0x92   : > { %v551_v42 = vmul.f32 %v1950_v35, %v494_v40  ;;  %v550_v43 = vmul.f32 %v1949_v36, %v489_v41 }
  0x94   : > { %v2609_v47 = vmul.f32 %v2585_v21, %v551_v42  ;;  %v2612_v48 = vmul.f32 %v2585_v21, %v550_v43 }
  0x95   : > { %v504_v49 = vpop.permute.xlu1 %503  ;;  %v499_v50 = vpop.permute.xlu0 %498 }
  0x96   : > { %v553_v51 = vmul.f32 %v1954_v44, %v504_v49  ;;  %v552_v52 = vmul.f32 %v1953_v45, %v499_v50 }
  0x98   : > { %v2618_v56 = vmul.f32 %v2585_v21, %v553_v51  ;;  %v2621_v57 = vmul.f32 %v2585_v21, %v552_v52 }
  0x99   : > { %v514_v58 = vpop.permute.xlu1 %513  ;;  %v509_v59 = vpop.permute.xlu0 %508 }
  0x9a   : > { %v555_v60 = vmul.f32 %v1958_v53, %v514_v58  ;;  %v554_v61 = vmul.f32 %v1957_v54, %v509_v59 }
  0x9c   : > { %v2627_v1 = vmul.f32 %v2585_v21, %v555_v60  ;;  %v2630_v2 = vmul.f32 %v2585_v21, %v554_v61 }
  0x9d   : > { %v524_v3 = vpop.permute.xlu1 %523  ;;  %v519_v4 = vpop.permute.xlu0 %518 }
  0x9e   : > { %v557_v5 = vmul.f32 %v1962_v62, %v524_v3  ;;  %v556_v6 = vmul.f32 %v1961_v63, %v519_v4 }
  0xa0   : > { %v2636_v10 = vmul.f32 %v2585_v21, %v557_v5  ;;  %v2639_v11 = vmul.f32 %v2585_v21, %v556_v6 }
  0xa1   : > { %v534_v12 = vpop.permute.xlu1 %533  ;;  %v529_v13 = vpop.permute.xlu0 %528 }
  0xa2   : > { %v559_v14 = vmul.f32 %v1966_v7, %v534_v12  ;;  %v558_v15 = vmul.f32 %v1965_v8, %v529_v13 }
  0xa4   : > { %v2642_v18 = vmul.f32 %v2585_v21, %v559_v14  ;;  %v2645_v19 = vmul.f32 %v2585_v21, %v558_v15  ;;  %588 = sbr.rel (%p1888_p4) target bundleno = 609 (0x261), region = 68 }
  0xa5   : > { %v544_v20 = vpop.permute.xlu1 %543  ;;  %v539_v22 = vpop.permute.xlu0 %538 }
  0xa6   : > { %v561_v23 = vmul.f32 %v1970_v16, %v544_v20  ;;  %v560_v24 = vmul.f32 %v1969_v17, %v539_v22 }
  0xa8   : > { %v2648_v25 = vmul.f32 %v2585_v21, %v561_v23  ;;  %v2651_v26 = vmul.f32 %v2585_v21, %v560_v24 }
  0xa9   : > { %v2440_v27 = vmov 0.0   ;;  %vm2441_vm0 = vmmov 0   ;;  %v589_v21 = vld [vmem:[%s2956_s0] sm:$0xf]  ;;  %vm716_vm1 = vcmask 31744   ;;  %v600_v31 = vld [vmem:[%s2961_s5 + $0x10] sm:$0xff] }
  0xaa   : > { %2117 = vmatprep.subr.mxu0 %v2440_v27  ;;  %2149 = vmatprep.mubr.msk.f32.mxu0 %vm2441_vm0, %v2440_v27  ;;  %v590_v28 = vld [vmem:[%s2960_s4] sm:$0xff]  ;;  %v2442_v33 = vmov 0   ;;  %v601_v34 = vld [vmem:[%s2961_s5 + $0x18] sm:$0xff]  ;;  %v599_v35 = vld [vmem:[%s2961_s5 + $0x8] sm:$0xff]  ;;  %vm741_vm2 = vcmask 1043456  }
  0xab   : > { %2118 = vmatpush3.msra.mxu0 %v2648_v25  ;;  %2154 = vmatprep.mubr.msk.f32.mxu1 %vm716_vm1, %v590_v28  ;;  %v598_v32 = vld [vmem:[%s2961_s5] sm:$0xff]  ;;  %v603_v36 = vld [vmem:[%s2961_s5 + $0x28] sm:$0xff]  ;;  %v605_v40 = vld [vmem:[%s2961_s5 + $0x38] sm:$0xff] }
  0xac   : > { %2119 = vmatprep.subr.mxu0 %v2440_v27  ;;  %2409 = vset.pattern.permute.xlu1 %v2442_v33  ;;  %v602_v37 = vld [vmem:[%s2961_s5 + $0x20] sm:$0xff]  ;;  %v604_v41 = vld [vmem:[%s2961_s5 + $0x30] sm:$0xff]  ;;  %v591_v43 = vld [vmem:[%s2960_s4 + $0x8] sm:$0xff] }
  0xad   : > { %2120 = vmatpush3.msra.mxu0 %v2651_v26  ;;  %2408 = vset.pattern.permute.xlu0 %v2442_v33  ;;  %v592_v44 = vld [vmem:[%s2960_s4 + $0x10] sm:$0xff]  ;;  %v593_v46 = vld [vmem:[%s2960_s4 + $0x18] sm:$0xff]  ;;  %v594_v49 = vld [vmem:[%s2960_s4 + $0x20] sm:$0xff] }
  0xae   : > { %2121 = vmatprep.subr.mxu0 %v2440_v27  ;;  %688 = vperm.xlu1 %2409, %v600_v31   ;;  %v595_v50 = vld [vmem:[%s2960_s4 + $0x28] sm:$0xff]  ;;  %v596_v51 = vld [vmem:[%s2960_s4 + $0x30] sm:$0xff]  ;;  %v597_v52 = vld [vmem:[%s2960_s4 + $0x38] sm:$0xff] }
  0xaf   : > { %2122 = vmatpush3.msra.mxu0 %v2642_v18  ;;  %678 = vperm.xlu0 %2408, %v598_v32  }
  0xb0   : > { %2123 = vmatprep.subr.mxu0 %v2440_v27 }
  0xb1   : > { %2124 = vmatpush3.msra.mxu0 %v2645_v19 }
  0xb2   : > { %2125 = vmatprep.subr.mxu0 %v2440_v27  ;;  %693 = vperm.xlu1 %2409, %v601_v34  }
  0xb3   : > { %2126 = vmatpush3.msra.mxu0 %v2636_v10  ;;  %683 = vperm.xlu0 %2408, %v599_v35  }
  0xb4   : > { %2127 = vmatprep.subr.mxu0 %v2440_v27 }
  0xb5   : > { %2128 = vmatpush3.msra.mxu0 %v2639_v11 }
  0xb6   : > { %2129 = vmatprep.subr.mxu0 %v2440_v27  ;;  %703 = vperm.xlu1 %2409, %v603_v36  }
  0xb7   : > { %2130 = vmatpush3.msra.mxu0 %v2627_v1  ;;  %698 = vperm.xlu0 %2408, %v602_v37  }
  0xb8   : > { %2131 = vmatprep.subr.mxu0 %v2440_v27 }
  0xb9   : > { %2132 = vmatpush3.msra.mxu0 %v2630_v2 }
  0xba   : > { %2133 = vmatprep.subr.mxu0 %v2440_v27  ;;  %713 = vperm.xlu1 %2409, %v605_v40  }
  0xbb   : > { %2134 = vmatpush3.msra.mxu0 %v2618_v56  ;;  %708 = vperm.xlu0 %2408, %v604_v41  }
  0xbc   : > { %2135 = vmatprep.subr.mxu0 %v2440_v27 }
  0xbd   : > { %2136 = vmatpush3.msra.mxu0 %v2621_v57 }
  0xbe   : > { %2137 = vmatprep.subr.mxu0 %v2440_v27 }
  0xbf   : > { %2138 = vmatpush3.msra.mxu0 %v2609_v47 }
  0xc0   : > { %2139 = vmatprep.subr.mxu0 %v2440_v27 }
  0xc1   : > { %2140 = vmatpush3.msra.mxu0 %v2612_v48 }
  0xc2   : > { %2141 = vmatprep.subr.mxu0 %v2440_v27 }
  0xc3   : > { %2142 = vmatpush3.msra.mxu0 %v2600_v38 }
  0xc4   : > { %2143 = vmatprep.subr.mxu0 %v2440_v27 }
  0xc5   : > { %2144 = vmatpush3.msra.mxu0 %v2591_v29 }
  0xc6   : > { %2145 = vmatprep.subr.mxu0 %v2440_v27 }
  0xc7   : > { %2146 = vmatpush3.msra.mxu0 %v2603_v39 }
  0xc8   : > { %2147 = vmatprep.subr.mxu0 %v2440_v27 }
  0xc9   : > { %2148 = vmatpush3.msra.mxu0 %v2594_v30 }
  0xca   : > { %2150 = vmatmul.mubr.f32.vlgmr.msra.gmra.mxu0 %v589_v21 }
 0x129   : > { %v689_v53 = vpop.permute.xlu1 %688 }
 0x12a   : > { %v679_v54 = vpop.permute.xlu0 %678 }
 0x12d   : > { %v694_v55 = vpop.permute.xlu1 %693 }
 0x12e   : > { %v684_v58 = vpop.permute.xlu0 %683 }
 0x131   : > { %v704_v5 = vpop.permute.xlu1 %703 }
 0x132   : > { %v699_v9 = vpop.permute.xlu0 %698 }
 0x135   : > { %v714_v20 = vpop.permute.xlu1 %713 }
 0x136   : > { %v709_v27 = vpop.permute.xlu0 %708 }
 0x18a   : > { %v672_v42 = vpop.f32.mrf.mxu0 }
 0x18b   : > { %2152 = vmatprep.subr.msk.mxu1 %vm741_vm2, %v672_v42 }
 0x18c   : > { %v2151_v45 = vpop.f32.mrf.mxu0  ;;  %2153 = vmatpush3.msk.msra.mxu1 %vm741_vm2, %v672_v42 }
 0x18d   : > { %2155 = vmatmul.mubr.msk.f32.vlgmr.msra.gmra.mxu1 %vm716_vm1, %v591_v43 }
 0x18e   : > { %2157 = vmatprep.mubr.msk.f32.mxu1 %vm716_vm1, %v592_v44 }
 0x191   : > { %2158 = vmatmul.mubr.msk.f32.gmra.mxu1 %vm716_vm1, %v593_v46 }
 0x192   : > { %2160 = vmatprep.mubr.msk.f32.mxu1 %vm716_vm1, %v594_v49 }
 0x195   : > { %2161 = vmatmul.mubr.msk.f32.gmra.mxu1 %vm716_vm1, %v595_v50 }
 0x196   : > { %2163 = vmatprep.mubr.msk.f32.mxu1 %vm716_vm1, %v596_v51 }
 0x199   : > { %2164 = vmatmul.mubr.msk.f32.gmra.mxu1 %vm716_vm1, %v597_v52 }
 0x24d   : > { %v2156_v59 = vpop.f32.mrf.mxu1 }
 0x24e   : > { %v817_v60 = vadd.f32 %v2156_v59, %v684_v58 }
 0x24f   : > { %v811_v61 = vpop.f32.mrf.mxu1 }
 0x250   : > { %v851_v62 = vmax.f32 %v817_v60, 0.0  ;;  %v812_v63 = vadd.f32 %v811_v61, %v679_v54 }
 0x251   : > { %v2159_v0 = vpop.f32.mrf.mxu1 }
 0x252   : > { %862 = vst [vmem:[#allocation2] sm:$0xff] %v851_v62  ;;  %v850_v3 = vmax.f32 %v812_v63, 0.0  ;;  %v827_v4 = vadd.f32 %v2159_v0, %v694_v55 }
 0x253   : > { %v821_v6 = vpop.f32.mrf.mxu1 }
 0x254   : > { %861 = vst [vmem:[#allocation2 + $0x30] sm:$0xff] %v850_v3  ;;  %v853_v7 = vmax.f32 %v827_v4, 0.0  ;;  %v822_v8 = vadd.f32 %v821_v6, %v689_v53 }
 0x255   : > { %v2162_v12 = vpop.f32.mrf.mxu1 }
 0x256   : > { %864 = vst [vmem:[#allocation2 + $0x18] sm:$0xff] %v853_v7  ;;  %v852_v13 = vmax.f32 %v822_v8, 0.0  ;;  %v837_v14 = vadd.f32 %v2162_v12, %v704_v5 }
 0x257   : > { %v831_v15 = vpop.f32.mrf.mxu1 }
 0x258   : > { %863 = vst [vmem:[#allocation2 + $0x58] sm:$0xff] %v852_v13  ;;  %v855_v16 = vmax.f32 %v837_v14, 0.0  ;;  %v832_v17 = vadd.f32 %v831_v15, %v699_v9 }
 0x259   : > { %v2165_v22 = vpop.f32.mrf.mxu1 }
 0x25a   : > { %866 = vst [vmem:[#allocation2 + $0x68] sm:$0xff] %v855_v16  ;;  %v854_v23 = vmax.f32 %v832_v17, 0.0  ;;  %v847_v24 = vadd.f32 %v2165_v22, %v714_v20 }
 0x25b   : > { %v841_v21 = vpop.f32.mrf.mxu1 }
 0x25c   : > { %865 = vst [vmem:[#allocation2 + $0x50] sm:$0xff] %v854_v23  ;;  %v857_v28 = vmax.f32 %v847_v24, 0.0  ;;  %v842_v31 = vadd.f32 %v841_v21, %v709_v27 }
 0x25e   : > { %868 = vst [vmem:[#allocation2 + $0x48] sm:$0xff] %v857_v28  ;;  %v856_v32 = vmax.f32 %v842_v31, 0.0 }
 0x260   : > { %867 = vst [vmem:[#allocation2 + $0x8] sm:$0xff] %v856_v32 }
 0x261 PF: > { %p870_p5 = scmp.lt.s32.totalorder %s2429_s17, 0  ;;  %s871_s30 = ssub.s32 0, %s2429_s17 }
 0x262   : > { %s1898_s12 = smin.u32 %s2429_s17, %s871_s30  ;;  %p869_p6 = scmp.gt.s32.totalorder %s2429_s17, 0 }
 0x263   : > { %s873_s13 = sand.u32 1, %s1898_s12  }
 0x264   : > { %s874_s14 = ssub.s32 0, %s873_s13 }
 0x265   : > { %s2973_s14 = smov (!%p870_p5, %s874_s14), %s873_s13 }
 0x266   : > { %p876_p7 = scmp.eq.s32.totalorder %s2973_s14, 1 }
 0x268   : > { %p877_p8 = pnand %p876_p7, %p869_p6 }
 0x269   : > { %s1899_s15 = sadd.s32 (!%p877_p8), 4294967295, %s2429_s17 }
 0x26a   : > { %880 = sbr.rel (%p877_p8) target bundleno = 1088 (0x440), region = 72  ;;  %s1900_s16 = sshll.u32 (!%p877_p8), %s1899_s15, 6 }
 0x26b   : > { %s2774_s23 = scalar_lea.vmem (!%p877_p8), %s2962_s6, %s1900_s16  ;;  %s892_s26 = scalar_lea.vmem (!%p877_p8), %s2963_s7, %s1900_s16 }
 0x26f   : > { %2166 = vmatprep.subr.mxu0 %v2648_v25  ;;  %v901_v33 = vld [vmem:[#allocation2 + $0x30] sm:$0xff]  ;;  %v902_v34 = vld [vmem:[#allocation2] sm:$0xff]  ;;  %v903_v35 = vld [vmem:[#allocation2 + $0x58] sm:$0xff]  ;;  %vm1054_vm3 = vcmask 523264   ;;  %v2443_v44 = vmov 0  }
 0x270   : > { %2167 = vmatpush3.msra.mxu0 %v2648_v25  ;;  %2198 = vmatprep.mubr.f32.mxu0 %v901_v33  ;;  %v904_v36 = vld [vmem:[#allocation2 + $0x18] sm:$0xff]  ;;  %v905_v37 = vld [vmem:[#allocation2 + $0x50] sm:$0xff]  ;;  %v906_v40 = vld [vmem:[#allocation2 + $0x68] sm:$0xff] }
 0x271   : > { %2168 = vmatprep.subr.mxu0 %v2651_v26  ;;  %v907_v41 = vld [vmem:[#allocation2 + $0x8] sm:$0xff]  ;;  %v884_v43 = vld [vmem:[%s2774_s23] sm:$0xff]  ;;  %2411 = vset.pattern.permute.xlu1 %v2443_v44  ;;  %v895_v45 = vld [vmem:[%s892_s26 + $0x10] sm:$0xff] }
 0x272   : > { %2169 = vmatpush3.msra.mxu0 %v2651_v26  ;;  %v908_v42 = vld [vmem:[#allocation2 + $0x48] sm:$0xff]  ;;  %2226 = vmatprep.mubr.msk.f32.mxu1 %vm1054_vm3, %v884_v43  ;;  %v893_v46 = vld [vmem:[%s892_s26] sm:$0xff]  ;;  %v896_v49 = vld [vmem:[%s892_s26 + $0x18] sm:$0xff] }
 0x273   : > { %2170 = vmatprep.subr.mxu0 %v2642_v18  ;;  %2410 = vset.pattern.permute.xlu0 %v2443_v44  ;;  %v894_v50 = vld [vmem:[%s892_s26 + $0x8] sm:$0xff]  ;;  %v897_v52 = vld [vmem:[%s892_s26 + $0x20] sm:$0xff]  ;;  %v900_v53 = vld [vmem:[%s892_s26 + $0x38] sm:$0xff] }
 0x274   : > { %2171 = vmatpush3.msra.mxu0 %v2642_v18  ;;  %1026 = vperm.xlu1 %2411, %v895_v45   ;;  %v898_v51 = vld [vmem:[%s892_s26 + $0x28] sm:$0xff]  ;;  %v899_v54 = vld [vmem:[%s892_s26 + $0x30] sm:$0xff]  ;;  %v887_v5 = vld [vmem:[%s2774_s23 + $0x18] sm:$0xff] }
 0x275   : > { %2172 = vmatprep.subr.mxu0 %v2645_v19  ;;  %1016 = vperm.xlu0 %2410, %v893_v46   ;;  %v885_v3 = vld [vmem:[%s2774_s23 + $0x8] sm:$0xff]  ;;  %v886_v4 = vld [vmem:[%s2774_s23 + $0x10] sm:$0xff]  ;;  %v888_v6 = vld [vmem:[%s2774_s23 + $0x20] sm:$0xff] }
 0x276   : > { %2173 = vmatpush3.msra.mxu0 %v2645_v19  ;;  %v889_v7 = vld [vmem:[%s2774_s23 + $0x28] sm:$0xff]  ;;  %v890_v8 = vld [vmem:[%s2774_s23 + $0x30] sm:$0xff]  ;;  %v891_v9 = vld [vmem:[%s2774_s23 + $0x38] sm:$0xff] }
 0x277   : > { %2174 = vmatprep.subr.mxu0 %v2636_v10 }
 0x278   : > { %2175 = vmatpush3.msra.mxu0 %v2636_v10  ;;  %1031 = vperm.xlu1 %2411, %v896_v49  }
 0x279   : > { %2176 = vmatprep.subr.mxu0 %v2639_v11  ;;  %1021 = vperm.xlu0 %2410, %v894_v50  }
 0x27a   : > { %2177 = vmatpush3.msra.mxu0 %v2639_v11 }
 0x27b   : > { %2178 = vmatprep.subr.mxu0 %v2627_v1 }
 0x27c   : > { %2179 = vmatpush3.msra.mxu0 %v2627_v1  ;;  %1041 = vperm.xlu1 %2411, %v898_v51  }
 0x27d   : > { %2180 = vmatprep.subr.mxu0 %v2630_v2  ;;  %1036 = vperm.xlu0 %2410, %v897_v52  }
 0x27e   : > { %2181 = vmatpush3.msra.mxu0 %v2630_v2 }
 0x27f   : > { %2182 = vmatprep.subr.mxu0 %v2618_v56 }
 0x280   : > { %2183 = vmatpush3.msra.mxu0 %v2618_v56  ;;  %1051 = vperm.xlu1 %2411, %v900_v53  }
 0x281   : > { %2184 = vmatprep.subr.mxu0 %v2621_v57  ;;  %1046 = vperm.xlu0 %2410, %v899_v54  }
 0x282   : > { %2185 = vmatpush3.msra.mxu0 %v2621_v57 }
 0x283   : > { %2186 = vmatprep.subr.mxu0 %v2609_v47 }
 0x284   : > { %2187 = vmatpush3.msra.mxu0 %v2609_v47 }
 0x285   : > { %2188 = vmatprep.subr.mxu0 %v2612_v48 }
 0x286   : > { %2189 = vmatpush3.msra.mxu0 %v2612_v48 }
 0x287   : > { %2190 = vmatprep.subr.mxu0 %v2600_v38 }
 0x288   : > { %2191 = vmatpush3.msra.mxu0 %v2600_v38 }
 0x289   : > { %2192 = vmatprep.subr.mxu0 %v2591_v29 }
 0x28a   : > { %2193 = vmatpush3.msra.mxu0 %v2591_v29 }
 0x28b   : > { %2194 = vmatprep.subr.mxu0 %v2603_v39 }
 0x28c   : > { %2195 = vmatpush3.msra.mxu0 %v2603_v39 }
 0x28d   : > { %2196 = vmatprep.subr.mxu0 %v2594_v30 }
 0x28e   : > { %2197 = vmatpush3.msra.mxu0 %v2594_v30 }
 0x28f   : > { %2199 = vmatmul.mubr.f32.vlgmr.msra.gmra.mxu0 %v902_v34 }
 0x290   : > { %2201 = vmatprep.mubr.f32.mxu0 %v903_v35 }
 0x293   : > { %2202 = vmatmul.mubr.f32.gmra.mxu0 %v904_v36 }
 0x294   : > { %2204 = vmatprep.mubr.f32.mxu0 %v905_v37 }
 0x297   : > { %2205 = vmatmul.mubr.f32.gmra.mxu0 %v906_v40 }
 0x298   : > { %2207 = vmatprep.mubr.f32.mxu0 %v907_v41 }
 0x29b   : > { %2208 = vmatmul.mubr.f32.gmra.mxu0 %v908_v42 }
 0x2ef   : > { %v1027_v12 = vpop.permute.xlu1 %1026 }
 0x2f0   : > { %v1017_v13 = vpop.permute.xlu0 %1016 }
 0x2f3   : > { %v1032_v14 = vpop.permute.xlu1 %1031 }
 0x2f4   : > { %v1022_v15 = vpop.permute.xlu0 %1021 }
 0x2f7   : > { %v1042_v28 = vpop.permute.xlu1 %1041 }
 0x2f8   : > { %v1037_v34 = vpop.permute.xlu0 %1036 }
 0x2fb   : > { %v1052_v43 = vpop.permute.xlu1 %1051 }
 0x2fc   : > { %v1047_v49 = vpop.permute.xlu0 %1046 }
 0x34f   : > { %v2200_v55 = vpop.f32.mrf.mxu0 }
 0x351   : > { %v975_v58 = vpop.f32.mrf.mxu0 }
 0x353   : > { %v2203_v59 = vpop.f32.mrf.mxu0 }
 0x355   : > { %v985_v60 = vpop.f32.mrf.mxu0 }
 0x357   : > { %v2206_v61 = vpop.f32.mrf.mxu0 }
 0x359   : > { %v995_v62 = vpop.f32.mrf.mxu0 }
 0x35b   : > { %v2209_v63 = vpop.f32.mrf.mxu0 }
 0x35c   : > { %2210 = vmatprep.subr.mxu1 %v2209_v63 }
 0x35d   : > { %v1005_v0 = vpop.f32.mrf.mxu0  ;;  %2211 = vmatpush3.msra.mxu1 %v2209_v63 }
 0x35e   : > { %2212 = vmatprep.subr.mxu1 %v1005_v0 }
 0x35f   : > { %2213 = vmatpush3.msra.mxu1 %v1005_v0 }
 0x360   : > { %2214 = vmatprep.subr.mxu1 %v2206_v61 }
 0x361   : > { %2215 = vmatpush3.msra.mxu1 %v2206_v61 }
 0x362   : > { %2216 = vmatprep.subr.mxu1 %v995_v62 }
 0x363   : > { %2217 = vmatpush3.msra.mxu1 %v995_v62 }
 0x364   : > { %2218 = vmatprep.subr.mxu1 %v2203_v59 }
 0x365   : > { %2219 = vmatpush3.msra.mxu1 %v2203_v59 }
 0x366   : > { %2220 = vmatprep.subr.mxu1 %v985_v60 }
 0x367   : > { %2221 = vmatpush3.msra.mxu1 %v985_v60 }
 0x368   : > { %2222 = vmatprep.subr.mxu1 %v2200_v55 }
 0x369   : > { %2223 = vmatpush3.msra.mxu1 %v2200_v55 }
 0x36a   : > { %2224 = vmatprep.subr.mxu1 %v975_v58 }
 0x36b   : > { %2225 = vmatpush3.msra.mxu1 %v975_v58 }
 0x36c   : > { %2227 = vmatmul.mubr.msk.f32.vlgmr.msra.gmra.mxu1 %vm1054_vm3, %v885_v3 }
 0x36d   : > { %2229 = vmatprep.mubr.msk.f32.mxu1 %vm1054_vm3, %v886_v4 }
 0x370   : > { %2230 = vmatmul.mubr.msk.f32.gmra.mxu1 %vm1054_vm3, %v887_v5 }
 0x371   : > { %2232 = vmatprep.mubr.msk.f32.mxu1 %vm1054_vm3, %v888_v6 }
 0x374   : > { %2233 = vmatmul.mubr.msk.f32.gmra.mxu1 %vm1054_vm3, %v889_v7 }
 0x375   : > { %2235 = vmatprep.mubr.msk.f32.mxu1 %vm1054_vm3, %v890_v8 }
 0x378   : > { %2236 = vmatmul.mubr.msk.f32.gmra.mxu1 %vm1054_vm3, %v891_v9 }
 0x42c   : > { %v2228_v16 = vpop.f32.mrf.mxu1 }
 0x42d   : > { %v1151_v17 = vadd.f32 %v2228_v16, %v1022_v15 }
 0x42e   : > { %v1145_v20 = vpop.f32.mrf.mxu1 }
 0x42f   : > { %v1185_v22 = vmax.f32 %v1151_v17, 0.0  ;;  %v1146_v23 = vadd.f32 %v1145_v20, %v1017_v13 }
 0x430   : > { %v2231_v24 = vpop.f32.mrf.mxu1 }
 0x431   : > { %1910 = vst [vmem:[#allocation2 + $0x20] sm:$0xff] %v1185_v22  ;;  %v1184_v27 = vmax.f32 %v1146_v23, 0.0  ;;  %v1161_v21 = vadd.f32 %v2231_v24, %v1032_v14 }
 0x432   : > { %v1155_v31 = vpop.f32.mrf.mxu1 }
 0x433   : > { %1909 = vst [vmem:[#allocation2 + $0x40] sm:$0xff] %v1184_v27  ;;  %v1187_v32 = vmax.f32 %v1161_v21, 0.0  ;;  %v1156_v33 = vadd.f32 %v1155_v31, %v1027_v12 }
 0x434   : > { %v2234_v35 = vpop.f32.mrf.mxu1 }
 0x435   : > { %1912 = vst [vmem:[#allocation2 + $0x38] sm:$0xff] %v1187_v32  ;;  %v1186_v36 = vmax.f32 %v1156_v33, 0.0  ;;  %v1171_v37 = vadd.f32 %v2234_v35, %v1042_v28 }
 0x436   : > { %v1165_v40 = vpop.f32.mrf.mxu1 }
 0x437   : > { %1911 = vst [vmem:[#allocation2 + $0x10] sm:$0xff] %v1186_v36  ;;  %v1189_v41 = vmax.f32 %v1171_v37, 0.0  ;;  %v1166_v42 = vadd.f32 %v1165_v40, %v1037_v34 }
 0x438   : > { %v2237_v44 = vpop.f32.mrf.mxu1 }
 0x439   : > { %1914 = vst [vmem:[#allocation2 + $0x70] sm:$0xff] %v1189_v41  ;;  %v1188_v45 = vmax.f32 %v1166_v42, 0.0  ;;  %v1181_v46 = vadd.f32 %v2237_v44, %v1052_v43 }
 0x43a   : > { %v1175_v50 = vpop.f32.mrf.mxu1 }
 0x43b   : > { %1913 = vst [vmem:[#allocation2 + $0x60] sm:$0xff] %v1188_v45  ;;  %v1191_v51 = vmax.f32 %v1181_v46, 0.0  ;;  %v1176_v52 = vadd.f32 %v1175_v50, %v1047_v49 }
 0x43d   : > { %1916 = vst [vmem:[#allocation2 + $0x28] sm:$0xff] %v1191_v51  ;;  %v1190_v53 = vmax.f32 %v1176_v52, 0.0 }
 0x43f   : > { %1915 = vst [vmem:[#allocation2 + $0x78] sm:$0xff] %v1190_v53 }
 0x440 PF: > { %p1204_p9 = scmp.eq.s32.totalorder %s2973_s14, 0 }
 0x442   : > { %p1205_p10 = pnand %p1204_p9, %p869_p6 }
 0x443   : > { %s1917_s27 = sadd.s32 (!%p1205_p10), 4294967295, %s2429_s17 }
 0x444   : > { %1208 = sbr.rel (%p1205_p10) target bundleno = 1562 (0x61a), region = 76  ;;  %s1918_s28 = sshll.u32 (!%p1205_p10), %s1917_s27, 6 }
 0x445   : > { %s2834_s12 = scalar_lea.vmem (!%p1205_p10), %s2962_s6, %s1918_s28  ;;  %s1220_s15 = scalar_lea.vmem (!%p1205_p10), %s2963_s7, %s1918_s28 }
 0x449   : > { %2238 = vmatprep.subr.mxu0 %v2648_v25  ;;  %v1230_v54 = vld [vmem:[#allocation2 + $0x40] sm:$0xff]  ;;  %vm1383_vm4 = vcmask 523264   ;;  %v1227_v55 = vld [vmem:[%s1220_s15 + $0x30] sm:$0xff]  ;;  %v1213_v4 = vld [vmem:[%s2834_s12 + $0x8] sm:$0xff] }
 0x44a   : > { %2239 = vmatpush3.msra.mxu0 %v2648_v25  ;;  %2270 = vmatprep.mubr.f32.mxu0 %v1230_v54  ;;  %v1225_v25 = vld [vmem:[%s1220_s15 + $0x20] sm:$0xff]  ;;  %v1214_v5 = vld [vmem:[%s2834_s12 + $0x10] sm:$0xff]  ;;  %v1215_v6 = vld [vmem:[%s2834_s12 + $0x18] sm:$0xff] }
 0x44b   : > { %2240 = vmatprep.subr.mxu0 %v2651_v26  ;;  %v1216_v7 = vld [vmem:[%s2834_s12 + $0x20] sm:$0xff]  ;;  %v1217_v8 = vld [vmem:[%s2834_s12 + $0x28] sm:$0xff]  ;;  %v1218_v9 = vld [vmem:[%s2834_s12 + $0x30] sm:$0xff] }
 0x44c   : > { %2241 = vmatpush3.msra.mxu0 %v2651_v26  ;;  %v1228_v26 = vld [vmem:[%s1220_s15 + $0x38] sm:$0xff] }
 0x44d   : > { %2242 = vmatprep.subr.mxu0 %v2642_v18  ;;  %v1219_v12 = vld [vmem:[%s2834_s12 + $0x38] sm:$0xff] }
 0x44e   : > { %2243 = vmatpush3.msra.mxu0 %v2642_v18  ;;  %v1222_v18 = vld [vmem:[%s1220_s15 + $0x8] sm:$0xff] }
 0x44f   : > { %2244 = vmatprep.subr.mxu0 %v2645_v19 }
 0x450   : > { %2245 = vmatpush3.msra.mxu0 %v2645_v19  ;;  %v1226_v19 = vld [vmem:[%s1220_s15 + $0x28] sm:$0xff] }
 0x451   : > { %2246 = vmatprep.subr.mxu0 %v2636_v10 }
 0x452   : > { %2247 = vmatpush3.msra.mxu0 %v2636_v10  ;;  %v1221_v10 = vld [vmem:[%s1220_s15] sm:$0xff] }
 0x453   : > { %2248 = vmatprep.subr.mxu0 %v2639_v11 }
 0x454   : > { %2249 = vmatpush3.msra.mxu0 %v2639_v11  ;;  %v1224_v11 = vld [vmem:[%s1220_s15 + $0x18] sm:$0xff] }
 0x455   : > { %2250 = vmatprep.subr.mxu0 %v2627_v1 }
 0x456   : > { %2251 = vmatpush3.msra.mxu0 %v2627_v1  ;;  %v1236_v1 = vld [vmem:[#allocation2 + $0x78] sm:$0xff] }
 0x457   : > { %2252 = vmatprep.subr.mxu0 %v2630_v2 }
 0x458   : > { %2253 = vmatpush3.msra.mxu0 %v2630_v2  ;;  %v1223_v2 = vld [vmem:[%s1220_s15 + $0x10] sm:$0xff] }
 0x459   : > { %2254 = vmatprep.subr.mxu0 %v2618_v56 }
 0x45a   : > { %2255 = vmatpush3.msra.mxu0 %v2618_v56  ;;  %v1231_v56 = vld [vmem:[#allocation2 + $0x20] sm:$0xff] }
 0x45b   : > { %2256 = vmatprep.subr.mxu0 %v2621_v57 }
 0x45c   : > { %2257 = vmatpush3.msra.mxu0 %v2621_v57  ;;  %v1234_v57 = vld [vmem:[#allocation2 + $0x60] sm:$0xff] }
 0x45d   : > { %2258 = vmatprep.subr.mxu0 %v2609_v47 }
 0x45e   : > { %2259 = vmatpush3.msra.mxu0 %v2609_v47  ;;  %v1232_v47 = vld [vmem:[#allocation2 + $0x10] sm:$0xff] }
 0x45f   : > { %2260 = vmatprep.subr.mxu0 %v2612_v48 }
 0x460   : > { %2261 = vmatpush3.msra.mxu0 %v2612_v48  ;;  %v1233_v48 = vld [vmem:[#allocation2 + $0x38] sm:$0xff] }
 0x461   : > { %2262 = vmatprep.subr.mxu0 %v2600_v38 }
 0x462   : > { %2263 = vmatpush3.msra.mxu0 %v2600_v38  ;;  %v1235_v38 = vld [vmem:[#allocation2 + $0x70] sm:$0xff] }
 0x463   : > { %2264 = vmatprep.subr.mxu0 %v2591_v29 }
 0x464   : > { %2265 = vmatpush3.msra.mxu0 %v2591_v29  ;;  %v1237_v29 = vld [vmem:[#allocation2 + $0x28] sm:$0xff] }
 0x465   : > { %2266 = vmatprep.subr.mxu0 %v2603_v39 }
 0x466   : > { %2267 = vmatpush3.msra.mxu0 %v2603_v39  ;;  %v2444_v39 = vmov 0  }
 0x467   : > { %2268 = vmatprep.subr.mxu0 %v2594_v30  ;;  %2413 = vset.pattern.permute.xlu1 %v2444_v39 }
 0x468   : > { %2269 = vmatpush3.msra.mxu0 %v2594_v30  ;;  %v1212_v30 = vld [vmem:[%s2834_s12] sm:$0xff]  ;;  %2412 = vset.pattern.permute.xlu0 %v2444_v39 }
 0x469   : > { %2271 = vmatmul.mubr.f32.vlgmr.msra.gmra.mxu0 %v1231_v56  ;;  %2298 = vmatprep.mubr.msk.f32.mxu1 %vm1383_vm4, %v1212_v30 }
 0x46a   : > { %2273 = vmatprep.mubr.f32.mxu0 %v1232_v47  ;;  %1355 = vperm.xlu1 %2413, %v1223_v2  }
 0x46b   : > { %1345 = vperm.xlu0 %2412, %v1221_v10  }
 0x46d   : > { %2274 = vmatmul.mubr.f32.gmra.mxu0 %v1233_v48 }
 0x46e   : > { %2276 = vmatprep.mubr.f32.mxu0 %v1234_v57  ;;  %1360 = vperm.xlu1 %2413, %v1224_v11  }
 0x46f   : > { %1350 = vperm.xlu0 %2412, %v1222_v18  }
 0x471   : > { %2277 = vmatmul.mubr.f32.gmra.mxu0 %v1235_v38 }
 0x472   : > { %2279 = vmatprep.mubr.f32.mxu0 %v1236_v1  ;;  %1370 = vperm.xlu1 %2413, %v1226_v19  }
 0x473   : > { %1365 = vperm.xlu0 %2412, %v1225_v25  }
 0x475   : > { %2280 = vmatmul.mubr.f32.gmra.mxu0 %v1237_v29 }
 0x476   : > { %1380 = vperm.xlu1 %2413, %v1228_v26  }
 0x477   : > { %1375 = vperm.xlu0 %2412, %v1227_v55  }
 0x4e5   : > { %v1356_v13 = vpop.permute.xlu1 %1355 }
 0x4e6   : > { %v1346_v14 = vpop.permute.xlu0 %1345 }
 0x4e9   : > { %v1361_v15 = vpop.permute.xlu1 %1360 }
 0x4ea   : > { %v1351_v16 = vpop.permute.xlu0 %1350 }
 0x4ed   : > { %v1371_v31 = vpop.permute.xlu1 %1370 }
 0x4ee   : > { %v1366_v35 = vpop.permute.xlu0 %1365 }
 0x4f1   : > { %v1381_v44 = vpop.permute.xlu1 %1380 }
 0x4f2   : > { %v1376_v50 = vpop.permute.xlu0 %1375 }
 0x529   : > { %v2272_v58 = vpop.f32.mrf.mxu0 }
 0x52b   : > { %v1304_v59 = vpop.f32.mrf.mxu0 }
 0x52d   : > { %v2275_v60 = vpop.f32.mrf.mxu0 }
 0x52f   : > { %v1314_v61 = vpop.f32.mrf.mxu0 }
 0x531   : > { %v2278_v62 = vpop.f32.mrf.mxu0 }
 0x533   : > { %v1324_v63 = vpop.f32.mrf.mxu0 }
 0x535   : > { %v2281_v0 = vpop.f32.mrf.mxu0 }
 0x536   : > { %2282 = vmatprep.subr.mxu1 %v2281_v0 }
 0x537   : > { %v1334_v3 = vpop.f32.mrf.mxu0  ;;  %2283 = vmatpush3.msra.mxu1 %v2281_v0 }
 0x538   : > { %2284 = vmatprep.subr.mxu1 %v1334_v3 }
 0x539   : > { %2285 = vmatpush3.msra.mxu1 %v1334_v3 }
 0x53a   : > { %2286 = vmatprep.subr.mxu1 %v2278_v62 }
 0x53b   : > { %2287 = vmatpush3.msra.mxu1 %v2278_v62 }
 0x53c   : > { %2288 = vmatprep.subr.mxu1 %v1324_v63 }
 0x53d   : > { %2289 = vmatpush3.msra.mxu1 %v1324_v63 }
 0x53e   : > { %2290 = vmatprep.subr.mxu1 %v2275_v60 }
 0x53f   : > { %2291 = vmatpush3.msra.mxu1 %v2275_v60 }
 0x540   : > { %2292 = vmatprep.subr.mxu1 %v1314_v61 }
 0x541   : > { %2293 = vmatpush3.msra.mxu1 %v1314_v61 }
 0x542   : > { %2294 = vmatprep.subr.mxu1 %v2272_v58 }
 0x543   : > { %2295 = vmatpush3.msra.mxu1 %v2272_v58 }
 0x544   : > { %2296 = vmatprep.subr.mxu1 %v1304_v59 }
 0x545   : > { %2297 = vmatpush3.msra.mxu1 %v1304_v59 }
 0x546   : > { %2299 = vmatmul.mubr.msk.f32.vlgmr.msra.gmra.mxu1 %vm1383_vm4, %v1213_v4 }
 0x547   : > { %2301 = vmatprep.mubr.msk.f32.mxu1 %vm1383_vm4, %v1214_v5 }
 0x54a   : > { %2302 = vmatmul.mubr.msk.f32.gmra.mxu1 %vm1383_vm4, %v1215_v6 }
 0x54b   : > { %2304 = vmatprep.mubr.msk.f32.mxu1 %vm1383_vm4, %v1216_v7 }
 0x54e   : > { %2305 = vmatmul.mubr.msk.f32.gmra.mxu1 %vm1383_vm4, %v1217_v8 }
 0x54f   : > { %2307 = vmatprep.mubr.msk.f32.mxu1 %vm1383_vm4, %v1218_v9 }
 0x552   : > { %2308 = vmatmul.mubr.msk.f32.gmra.mxu1 %vm1383_vm4, %v1219_v12 }
 0x606   : > { %v2300_v17 = vpop.f32.mrf.mxu1 }
 0x607   : > { %v1480_v20 = vadd.f32 %v2300_v17, %v1351_v16 }
 0x608   : > { %v1474_v22 = vpop.f32.mrf.mxu1 }
 0x609   : > { %v1514_v23 = vmax.f32 %v1480_v20, 0.0  ;;  %v1475_v24 = vadd.f32 %v1474_v22, %v1346_v14 }
 0x60a   : > { %v2303_v27 = vpop.f32.mrf.mxu1 }
 0x60b   : > { %1525 = vst [vmem:[#allocation2] sm:$0xff] %v1514_v23  ;;  %v1513_v21 = vmax.f32 %v1475_v24, 0.0  ;;  %v1490_v28 = vadd.f32 %v2303_v27, %v1361_v15 }
 0x60c   : > { %v1484_v32 = vpop.f32.mrf.mxu1 }
 0x60d   : > { %1524 = vst [vmem:[#allocation2 + $0x30] sm:$0xff] %v1513_v21  ;;  %v1516_v33 = vmax.f32 %v1490_v28, 0.0  ;;  %v1485_v34 = vadd.f32 %v1484_v32, %v1356_v13 }
 0x60e   : > { %v2306_v36 = vpop.f32.mrf.mxu1 }
 0x60f   : > { %1527 = vst [vmem:[#allocation2 + $0x18] sm:$0xff] %v1516_v33  ;;  %v1515_v37 = vmax.f32 %v1485_v34, 0.0  ;;  %v1500_v40 = vadd.f32 %v2306_v36, %v1371_v31 }
 0x610   : > { %v1494_v41 = vpop.f32.mrf.mxu1 }
 0x611   : > { %1526 = vst [vmem:[#allocation2 + $0x58] sm:$0xff] %v1515_v37  ;;  %v1518_v42 = vmax.f32 %v1500_v40, 0.0  ;;  %v1495_v43 = vadd.f32 %v1494_v41, %v1366_v35 }
 0x612   : > { %v2309_v45 = vpop.f32.mrf.mxu1 }
 0x613   : > { %1529 = vst [vmem:[#allocation2 + $0x68] sm:$0xff] %v1518_v42  ;;  %v1517_v46 = vmax.f32 %v1495_v43, 0.0  ;;  %v1510_v49 = vadd.f32 %v2309_v45, %v1381_v44 }
 0x614   : > { %v1504_v51 = vpop.f32.mrf.mxu1 }
 0x615   : > { %1528 = vst [vmem:[#allocation2 + $0x50] sm:$0xff] %v1517_v46  ;;  %v1520_v52 = vmax.f32 %v1510_v49, 0.0  ;;  %v1505_v53 = vadd.f32 %v1504_v51, %v1376_v50 }
 0x617   : > { %1531 = vst [vmem:[#allocation2 + $0x48] sm:$0xff] %v1520_v52  ;;  %v1519_v54 = vmax.f32 %v1505_v53, 0.0 }
 0x619   : > { %1530 = vst [vmem:[#allocation2 + $0x8] sm:$0xff] %v1519_v54 }
 0x61a PF: > { %p1927_p11 = scmp.ne.s32.totalorder %s2429_s17, 9 }
 0x61c   : > { %1535 = sbr.rel (%p1927_p11) target bundleno = 2028 (0x7ec), region = 80 }
 0x621   : > { %v1584_v56 = vld [vmem:[%s2964_s8 + $0x78] sm:$0xff]  ;;  %v1583_v47 = vld [vmem:[%s2964_s8 + $0x70] sm:$0xff]  ;;  %vm1540_vm5 = vcmask 15360   ;;  %v2445_v48 = vmov 0.0   ;;  %v1582_v57 = vld [vmem:[%s2964_s8 + $0x68] sm:$0xff]  ;;  %vm2446_vm6 = vmmov 0  }
 0x622   : > { %2310 = vmatprep.subr.mxu0 %v1584_v56  ;;  %1542 = vst.msk [vmem:[#allocation3 + $0x8] sm:$0xff] %vm1540_vm5, %v2445_v48  ;;  %1541 = vst.msk [vmem:[#allocation3] sm:$0xff] %vm1540_vm5, %v2445_v48  ;;  %2354 = vmatprep.subr.mxu1 %v2445_v48  ;;  %v1581_v38 = vld [vmem:[%s2964_s8 + $0x60] sm:$0xff]  ;;  %v1580_v29 = vld [vmem:[%s2964_s8 + $0x58] sm:$0xff]  ;;  %v2447_v5 = vmov 0   ;;  %vm1725_vm7 = vcmask 523264  }
 0x623   : > { %1543 = vst.msk [vmem:[#allocation3 + $0x10] sm:$0xff] %vm1540_vm5, %v2445_v48  ;;  %1544 = vst.msk [vmem:[#allocation3 + $0x18] sm:$0xff] %vm1540_vm5, %v2445_v48  ;;  %2311 = vmatpush3.msra.mxu0 %v1584_v56  ;;  %v1928_v1 = vld [vmem:[#allocation2 + $0x40] sm:$0xff]  ;;  %v1579_v30 = vld [vmem:[%s2964_s8 + $0x50] sm:$0xff]  ;;  %2370 = vmatprep.mubr.msk.f32.mxu1 %vm2446_vm6, %v2445_v48 }
 0x624   : > { %1545 = vst.msk [vmem:[#allocation3 + $0x20] sm:$0xff] %vm1540_vm5, %v2445_v48  ;;  %1546 = vst.msk [vmem:[#allocation3 + $0x28] sm:$0xff] %vm1540_vm5, %v2445_v48  ;;  %2312 = vmatprep.subr.mxu0 %v1583_v47  ;;  %2342 = vmatprep.mubr.f32.mxu0 %v1928_v1  ;;  %v1578_v39 = vld [vmem:[%s2964_s8 + $0x48] sm:$0xff]  ;;  %v1577_v2 = vld [vmem:[%s2964_s8 + $0x40] sm:$0xff] }
 0x625   : > { %1547 = vst.msk [vmem:[#allocation3 + $0x30] sm:$0xff] %vm1540_vm5, %v2445_v48  ;;  %1548 = vst.msk [vmem:[#allocation3 + $0x38] sm:$0xff] %vm1540_vm5, %v2445_v48  ;;  %2313 = vmatpush3.msra.mxu0 %v1583_v47  ;;  %v1576_v10 = vld [vmem:[%s2964_s8 + $0x38] sm:$0xff]  ;;  %v1575_v11 = vld [vmem:[%s2964_s8 + $0x30] sm:$0xff]  ;;  %2414 = vset.pattern.permute.xlu0 %v2447_v5 }
 0x626   : > { %2314 = vmatprep.subr.mxu0 %v1582_v57  ;;  %v1574_v18 = vld [vmem:[%s2964_s8 + $0x28] sm:$0xff]  ;;  %v1573_v19 = vld [vmem:[%s2964_s8 + $0x20] sm:$0xff]  ;;  %v1572_v25 = vld [vmem:[%s2964_s8 + $0x18] sm:$0xff] }
 0x627   : > { %2315 = vmatpush3.msra.mxu0 %v1582_v57  ;;  %v1571_v26 = vld [vmem:[%s2964_s8 + $0x10] sm:$0xff]  ;;  %v1570_v55 = vld [vmem:[%s2964_s8 + $0x8] sm:$0xff]  ;;  %v1569_v58 = vld [vmem:[%s2964_s8] sm:$0xff] }
 0x628   : > { %2316 = vmatprep.subr.mxu0 %v1581_v38  ;;  %v1929_v59 = vld [vmem:[#allocation2 + $0x20] sm:$0xff]  ;;  %v1930_v60 = vld [vmem:[#allocation2 + $0x10] sm:$0xff]  ;;  %v1931_v61 = vld [vmem:[#allocation2 + $0x38] sm:$0xff] }
 0x629   : > { %2317 = vmatpush3.msra.mxu0 %v1581_v38  ;;  %v1932_v62 = vld [vmem:[#allocation2 + $0x60] sm:$0xff]  ;;  %v1933_v63 = vld [vmem:[#allocation2 + $0x70] sm:$0xff]  ;;  %v1934_v0 = vld [vmem:[#allocation2 + $0x78] sm:$0xff] }
 0x62a   : > { %2318 = vmatprep.subr.mxu0 %v1580_v29  ;;  %v1935_v3 = vld [vmem:[#allocation2 + $0x28] sm:$0xff]  ;;  %v1719_v4 = vld [vmem:[%s2966_s10] sm:$0xff]  ;;  %v1564_v13 = vld [vmem:[#allocation3 + $0x18] sm:$0xff] }
 0x62b   : > { %2319 = vmatpush3.msra.mxu0 %v1580_v29  ;;  %1722 = vperm.xlu0 %2414, %v1719_v4   ;;  %v1562_v6 = vld [vmem:[#allocation3 + $0x8] sm:$0xff]  ;;  %v1561_v8 = vld [vmem:[#allocation3] sm:$0xff]  ;;  %v1563_v16 = vld [vmem:[#allocation3 + $0x10] sm:$0xff] }
 0x62c   : > { %2320 = vmatprep.subr.mxu0 %v1579_v30  ;;  %v1566_v22 = vld [vmem:[#allocation3 + $0x28] sm:$0xff]  ;;  %v1565_v27 = vld [vmem:[#allocation3 + $0x20] sm:$0xff]  ;;  %v1568_v31 = vld [vmem:[#allocation3 + $0x38] sm:$0xff] }
 0x62d   : > { %2321 = vmatpush3.msra.mxu0 %v1579_v30  ;;  %v1567_v34 = vld [vmem:[#allocation3 + $0x30] sm:$0xff]  ;;  %v1710_v49 = vld [vmem:[%s2965_s9] sm:$0xff] }
 0x62e   : > { %2322 = vmatprep.subr.mxu0 %v1578_v39 }
 0x62f   : > { %2323 = vmatpush3.msra.mxu0 %v1578_v39 }
 0x630   : > { %2324 = vmatprep.subr.mxu0 %v1577_v2 }
 0x631   : > { %2325 = vmatpush3.msra.mxu0 %v1577_v2 }
 0x632   : > { %2326 = vmatprep.subr.mxu0 %v1576_v10 }
 0x633   : > { %2327 = vmatpush3.msra.mxu0 %v1576_v10 }
 0x634   : > { %2328 = vmatprep.subr.mxu0 %v1575_v11 }
 0x635   : > { %2329 = vmatpush3.msra.mxu0 %v1575_v11 }
 0x636   : > { %2330 = vmatprep.subr.mxu0 %v1574_v18 }
 0x637   : > { %2331 = vmatpush3.msra.mxu0 %v1574_v18 }
 0x638   : > { %2332 = vmatprep.subr.mxu0 %v1573_v19 }
 0x639   : > { %2333 = vmatpush3.msra.mxu0 %v1573_v19 }
 0x63a   : > { %2334 = vmatprep.subr.mxu0 %v1572_v25 }
 0x63b   : > { %2335 = vmatpush3.msra.mxu0 %v1572_v25 }
 0x63c   : > { %2336 = vmatprep.subr.mxu0 %v1571_v26 }
 0x63d   : > { %2337 = vmatpush3.msra.mxu0 %v1571_v26 }
 0x63e   : > { %2338 = vmatprep.subr.mxu0 %v1570_v55 }
 0x63f   : > { %2339 = vmatpush3.msra.mxu0 %v1570_v55 }
 0x640   : > { %2340 = vmatprep.subr.mxu0 %v1569_v58 }
 0x641   : > { %2341 = vmatpush3.msra.mxu0 %v1569_v58 }
 0x642   : > { %2343 = vmatmul.mubr.f32.vlgmr.msra.gmra.mxu0 %v1929_v59 }
 0x643   : > { %2345 = vmatprep.mubr.f32.mxu0 %v1930_v60 }
 0x646   : > { %2346 = vmatmul.mubr.f32.gmra.mxu0 %v1931_v61 }
 0x647   : > { %2348 = vmatprep.mubr.f32.mxu0 %v1932_v62 }
 0x64a   : > { %2349 = vmatmul.mubr.f32.gmra.mxu0 %v1933_v63 }
 0x64b   : > { %2351 = vmatprep.mubr.f32.mxu0 %v1934_v0 }
 0x64e   : > { %2352 = vmatmul.mubr.f32.gmra.mxu0 %v1935_v3 }
 0x6a6   : > { %v1723_v51 = vpop.permute.xlu0 %1722 }
 0x702   : > { %v2344_v7 = vpop.f32.mrf.mxu0 }
 0x703   : > { %v1691_v9 = vadd.f32 %v2344_v7, %v1562_v6 }
 0x704   : > { %v1651_v12 = vpop.f32.mrf.mxu0 }
 0x705   : > { %1700 = vst.msk [vmem:[#allocation3 + $0x8] sm:$0xff] %vm1540_vm5, %v1691_v9  ;;  %v1690_v14 = vadd.f32 %v1651_v12, %v1561_v8 }
 0x706   : > { %v2347_v15 = vpop.f32.mrf.mxu0 }
 0x707   : > { %1699 = vst.msk [vmem:[#allocation3] sm:$0xff] %vm1540_vm5, %v1690_v14  ;;  %v1693_v17 = vadd.f32 %v2347_v15, %v1564_v13 }
 0x708   : > { %v1661_v20 = vpop.f32.mrf.mxu0 }
 0x709   : > { %1702 = vst.msk [vmem:[#allocation3 + $0x18] sm:$0xff] %vm1540_vm5, %v1693_v17  ;;  %v1692_v23 = vadd.f32 %v1661_v20, %v1563_v16 }
 0x70a   : > { %v2350_v24 = vpop.f32.mrf.mxu0 }
 0x70b   : > { %1701 = vst.msk [vmem:[#allocation3 + $0x10] sm:$0xff] %vm1540_vm5, %v1692_v23  ;;  %v1695_v21 = vadd.f32 %v2350_v24, %v1566_v22 }
 0x70c   : > { %v1671_v28 = vpop.f32.mrf.mxu0  ;;  %v1712_v46 = vld [vmem:[#allocation3 + $0x8] sm:$0xff] }
 0x70d   : > { %1704 = vst.msk [vmem:[#allocation3 + $0x28] sm:$0xff] %vm1540_vm5, %v1695_v21  ;;  %v1694_v32 = vadd.f32 %v1671_v28, %v1565_v27 }
 0x70e   : > { %v2353_v33 = vpop.f32.mrf.mxu0  ;;  %v1711_v50 = vld [vmem:[#allocation3] sm:$0xff] }
 0x70f   : > { %1703 = vst.msk [vmem:[#allocation3 + $0x20] sm:$0xff] %vm1540_vm5, %v1694_v32  ;;  %v1697_v35 = vadd.f32 %v2353_v33, %v1568_v31 }
 0x710   : > { %v1681_v36 = vpop.f32.mrf.mxu0  ;;  %v1714_v44 = vld [vmem:[#allocation3 + $0x18] sm:$0xff] }
 0x711   : > { %1706 = vst.msk [vmem:[#allocation3 + $0x38] sm:$0xff] %vm1540_vm5, %v1697_v35  ;;  %v1696_v37 = vadd.f32 %v1681_v36, %v1567_v34 }
 0x712   : > { %v1713_v45 = vld [vmem:[#allocation3 + $0x10] sm:$0xff] }
 0x713   : > { %1705 = vst.msk [vmem:[#allocation3 + $0x30] sm:$0xff] %vm1540_vm5, %v1696_v37 }
 0x714   : > { %v1716_v42 = vld [vmem:[#allocation3 + $0x28] sm:$0xff] }
 0x716   : > { %v1715_v43 = vld [vmem:[#allocation3 + $0x20] sm:$0xff] }
 0x718   : > { %v1718_v40 = vld [vmem:[#allocation3 + $0x38] sm:$0xff] }
 0x719   : > { %2355 = vmatpush3.msra.mxu1 %v1718_v40 }
 0x71a   : > { %2356 = vmatprep.subr.mxu1 %v2445_v48  ;;  %v1717_v41 = vld [vmem:[#allocation3 + $0x30] sm:$0xff] }
 0x71b   : > { %2357 = vmatpush3.msra.mxu1 %v1717_v41 }
 0x71c   : > { %2358 = vmatprep.subr.mxu1 %v2445_v48 }
 0x71d   : > { %2359 = vmatpush3.msra.mxu1 %v1716_v42 }
 0x71e   : > { %2360 = vmatprep.subr.mxu1 %v2445_v48 }
 0x71f   : > { %2361 = vmatpush3.msra.mxu1 %v1715_v43 }
 0x720   : > { %2362 = vmatprep.subr.mxu1 %v2445_v48 }
 0x721   : > { %2363 = vmatpush3.msra.mxu1 %v1714_v44 }
 0x722   : > { %2364 = vmatprep.subr.mxu1 %v2445_v48 }
 0x723   : > { %2365 = vmatpush3.msra.mxu1 %v1713_v45 }
 0x724   : > { %2366 = vmatprep.subr.mxu1 %v2445_v48 }
 0x725   : > { %2367 = vmatpush3.msra.mxu1 %v1712_v46 }
 0x726   : > { %2368 = vmatprep.subr.mxu1 %v2445_v48 }
 0x727   : > { %2369 = vmatpush3.msra.mxu1 %v1711_v50 }
 0x728   : > { %2371 = vmatmul.mubr.msk.f32.vlgmr.msra.gmra.mxu1 %vm1725_vm7, %v1710_v49 }
 0x7e8   : > { %v1795_v52 = vpop.f32.mrf.mxu1 }
 0x7e9   : > { %v1796_v53 = vadd.f32 %v1795_v52, %v1723_v51 }
 0x7ea   : > { %v2372_v54 = vpop.f32.mrf.mxu1 }
 0x7eb   : > { %1799 = vst.msk [vmem:[%s2967_s11] sm:$0xff] %vm1540_vm5, %v1796_v53 }
 0x7ec PF: > { %s21_s19 = sadd.s32 1, %s2437_s19   ;;  %s2968_s17 = smov %s2433_s18 }
 0x7ed   : > { %p18_p12 = scmp.ge.s32.totalorder %s21_s19, 12   ;;  %s2969_s18 = smov %s2971_s20 }
 0x7ef   :  { %20 = sbr.rel (!%p18_p12) target bundleno = 2 (0x2), region = 129 }

</bundles_post_ra>
